<compile_context>
chip_gen: v6e
topology: v6e:2x2x1
jax: 0.10.0
libtpu: 0.0.40
codegen_flags: <defaults>
</compile_context>

<pallas_src>
import functools

import numpy as np
import jax
import jax.numpy as jnp
from jax import lax
from jax.experimental import pallas as pl
from jax.experimental.pallas import tpu as pltpu


# ------------------- host-side structured-weight folding --------------------

def _fold_conv3x3(w_oikk, scale, bias, W):
    """Torch (Cout,Cin,3,3) conv weight + folded-BN scale/bias -> structured
    matmul weight: rows index (ky, input_col, cin), cols index (out_col, cout),
    with padding=1 along W baked in and the BN scale folded."""
    Cout, Cin, K, _ = w_oikk.shape
    w = np.transpose(np.asarray(w_oikk), (2, 3, 1, 0))            # (ky,kx,ci,co)
    w = w * np.asarray(scale)[None, None, None, :]
    Ws = np.zeros((K * W * Cin, W * Cout), np.float32)
    for ky in range(K):
        for kx in range(K):
            for c in range(W):
                wc = c + kx - 1                                   # input column
                if 0 <= wc < W:
                    r0 = ky * W * Cin + wc * Cin
                    Ws[r0:r0 + Cin, c * Cout:(c + 1) * Cout] = w[ky, kx]
    b = np.tile(np.asarray(bias), W).reshape(1, W * Cout).astype(np.float32)
    return jnp.asarray(Ws), jnp.asarray(b)


def _fold_conv1x1(w_oikk, scale, bias, W):
    """Torch (Cout,Cin,1,1) shortcut conv + folded BN -> block-diagonal
    (W*Cin, W*Cout) matmul weight."""
    Cout, Cin = w_oikk.shape[0], w_oikk.shape[1]
    w = np.asarray(w_oikk).reshape(Cout, Cin).T * np.asarray(scale)[None, :]
    Ws = np.zeros((W * Cin, W * Cout), np.float32)
    for c in range(W):
        Ws[c * Cin:(c + 1) * Cin, c * Cout:(c + 1) * Cout] = w
    b = np.tile(np.asarray(bias), W).reshape(1, W * Cout).astype(np.float32)
    return jnp.asarray(Ws), jnp.asarray(b)


def fold_decoder_params(blocks, W):
    flat, meta = [], []
    for p in blocks:
        w1, b1 = _fold_conv3x3(p["w1"], *p["bn1"], W)
        w2, b2 = _fold_conv3x3(p["w2"], *p["bn2"], W)
        flat += [w1, b1, w2, b2]
        has_sc = "ws" in p
        if has_sc:
            ws, bs = _fold_conv1x1(p["ws"], *p["bns"], W)
            flat += [ws, bs]
        meta.append(has_sc)
    return flat, tuple(meta)


# ------------------------------ Pallas kernel --------------------------------

def _decoder_kernel(x_ref, *refs, meta):
    out_ref = refs[-1]
    wrefs = refs[:-1]

    def leaky(y):
        return jnp.where(y > 0, y, 0.2 * y)

    def conv3x3_bn(xv, w_ref, b_ref):
        h, win = xv.shape
        zrow = jnp.zeros((1, win), jnp.float32)
        xpad = jnp.concatenate([zrow, xv, zrow], axis=0)            # (H+2, win)
        patch = jnp.concatenate(                                    # (H, 3*win)
            [xpad[0:h], xpad[1:h + 1], xpad[2:h + 2]], axis=1)
        return jnp.dot(patch, w_ref[...],
                       preferred_element_type=jnp.float32) + b_ref[...]

    act = x_ref[0]                                                  # (H, W*Cin)
    idx = 0
    for has_sc in meta:                                             # static loop
        w1, b1, w2, b2 = wrefs[idx:idx + 4]
        idx += 4
        xin = act
        h = leaky(conv3x3_bn(xin, w1, b1))
        h = conv3x3_bn(h, w2, b2)
        if has_sc:
            ws, bs = wrefs[idx:idx + 2]
            idx += 2
            ident = jnp.dot(xin, ws[...],
                            preferred_element_type=jnp.float32) + bs[...]
        else:
            ident = xin
        act = leaky(h + ident)
    out_ref[0] = act                                                # (H, W*Cout)


def decoder_block_pallas(x_nchw, blocks):
    N, Cin, H, W = x_nchw.shape
    Cout = blocks[0]["w1"].shape[0]
    flat_w, meta = fold_decoder_params(blocks, W)

    # lane-dense (N, H, W*C) layout
    x = jnp.transpose(x_nchw, (0, 2, 3, 1)).reshape(N, H, W * Cin)

    kernel = functools.partial(_decoder_kernel, meta=meta)

    in_specs = [pl.BlockSpec((1, H, W * Cin), lambda n: (n, 0, 0))]
    in_specs += [pl.BlockSpec(w.shape, lambda n: (0, 0)) for w in flat_w]

    out = pl.pallas_call(
        kernel,
        out_shape=jax.ShapeDtypeStruct((N, H, W * Cout), jnp.float32),
        grid=(N,),
        in_specs=in_specs,
        out_specs=pl.BlockSpec((1, H, W * Cout), lambda n: (n, 0, 0)),
        compiler_params=pltpu.CompilerParams(
            dimension_semantics=("parallel",)),
    )(x, *flat_w)

    return jnp.transpose(out.reshape(N, H, W, Cout), (0, 3, 1, 2))  # -> NCHW


# ----------------------------- parameter init --------------------------------

def _kaiming(key, cout, cin, k):
    fan_in = cin * k * k
    return jax.random.normal(key, (cout, cin, k, k), jnp.float32) * (2.0 / fan_in) ** 0.5


def _bn(key, c, eps=1e-5):
    k1, k2, k3, k4 = jax.random.split(key, 4)
    gamma = 1.0 + 0.1 * jax.random.normal(k1, (c,), jnp.float32)
    beta = 0.1 * jax.random.normal(k2, (c,), jnp.float32)
    mean = 0.1 * jax.random.normal(k3, (c,), jnp.float32)
    var = jnp.abs(jax.random.normal(k4, (c,), jnp.float32)) + 0.5
    scale = gamma / jnp.sqrt(var + eps)
    bias = beta - mean * scale
    return scale, bias


def init_basic_block(key, cin, cout):
    ks = jax.random.split(key, 6)
    p = {"w1": _kaiming(ks[0], cout, cin, 3), "bn1": _bn(ks[1], cout),
         "w2": _kaiming(ks[2], cout, cout, 3), "bn2": _bn(ks[3], cout)}
    if cin != cout:                       # DecoderBlock always uses stride=1
        p["ws"] = _kaiming(ks[4], cout, cin, 1)
        p["bns"] = _bn(ks[5], cout)
    return p


def init_decoder_block(key, cin, cout, n_blocks):
    keys = jax.random.split(key, n_blocks)
    blocks = [init_basic_block(keys[0], cin, cout)]
    for i in range(1, n_blocks):
        blocks.append(init_basic_block(keys[i], cout, cout))
    return blocks


# ---------------------------- pure-JAX reference -----------------------------

def _conv_ref(x_nhwc, w_oikk, stride, pad):
    w = jnp.transpose(w_oikk, (2, 3, 1, 0))                        # HWIO
    return lax.conv_general_dilated(
        x_nhwc, w, (stride, stride), [(pad, pad), (pad, pad)],
        dimension_numbers=("NHWC", "HWIO", "NHWC"))


def basic_block_ref(x, p):
    s1, b1 = p["bn1"]
    s2, b2 = p["bn2"]
    out = _conv_ref(x, p["w1"], 1, 1) * s1 + b1
    out = jnp.where(out > 0, out, 0.2 * out)
    out = _conv_ref(out, p["w2"], 1, 1) * s2 + b2
    if "ws" in p:
        ss, bs = p["bns"]
        identity = _conv_ref(x, p["ws"], 1, 0) * ss + bs
    else:
        identity = x
    out = out + identity
    return jnp.where(out > 0, out, 0.2 * out)


def decoder_block_ref(x_nchw, blocks):
    x = jnp.transpose(x_nchw, (0, 2, 3, 1))
    for p in blocks:
        x = basic_block_ref(x, p)
    return jnp.transpose(x, (0, 3, 1, 2))


# ----------------------------------- main -------------------------------------

if __name__ == "__main__":
    key = jax.random.PRNGKey(0)
    k_x, k_p = jax.random.split(key)

    # DecoderBlock(in_channels=4, out_channels=8, n_blocks=2, cbam=False)
    N, C_in, C_out, H, W, n_blocks = 2, 4, 8, 16, 16, 2
    x = jax.random.normal(k_x, (N, C_in, H, W), jnp.float32)       # PyTorch NCHW

    blocks = init_decoder_block(k_p, C_in, C_out, n_blocks)

    out = jax.block_until_ready(decoder_block_pallas(x, blocks))
    ref = jax.block_until_ready(decoder_block_ref(x, blocks))

    assert out.shape == (N, C_out, H, W), out.shape
    err = float(jnp.max(jnp.abs(out - ref)))
    assert jnp.allclose(out, ref, atol=1e-3, rtol=1e-3), err

    print("KERNEL_OK")
</pallas_src>

<mosaic_0001>
module attributes {stable_mosaic.version = 11 : i64} {
  func.func @_decoder_kernel(%arg0: i32, %arg1: memref<1x16x64xf32, #tpu.memory_space<vmem>>, %arg2: memref<192x128xf32, #tpu.memory_space<vmem>>, %arg3: memref<1x128xf32, #tpu.memory_space<vmem>>, %arg4: memref<384x128xf32, #tpu.memory_space<vmem>>, %arg5: memref<1x128xf32, #tpu.memory_space<vmem>>, %arg6: memref<64x128xf32, #tpu.memory_space<vmem>>, %arg7: memref<1x128xf32, #tpu.memory_space<vmem>>, %arg8: memref<384x128xf32, #tpu.memory_space<vmem>>, %arg9: memref<1x128xf32, #tpu.memory_space<vmem>>, %arg10: memref<384x128xf32, #tpu.memory_space<vmem>>, %arg11: memref<1x128xf32, #tpu.memory_space<vmem>>, %arg12: memref<1x16x128xf32, #tpu.memory_space<vmem>>) attributes {dimension_semantics = [#tpu.dimension_semantics<parallel>], iteration_bounds = array<i64: 2>, scalar_prefetch = 0 : i64, scratch_operands = 0 : i64, tpu.core_type = #tpu.core_type<tc>, window_params = [{transform_indices = @transform_0, window_bounds = array<i64: 1, 16, 64>}, {pipeline_mode = #tpu.pipeline_mode<synchronous>, transform_indices = @transform_1, window_bounds = array<i64: 192, 128>}, {pipeline_mode = #tpu.pipeline_mode<synchronous>, transform_indices = @transform_2, window_bounds = array<i64: 1, 128>}, {pipeline_mode = #tpu.pipeline_mode<synchronous>, transform_indices = @transform_3, window_bounds = array<i64: 384, 128>}, {pipeline_mode = #tpu.pipeline_mode<synchronous>, transform_indices = @transform_4, window_bounds = array<i64: 1, 128>}, {pipeline_mode = #tpu.pipeline_mode<synchronous>, transform_indices = @transform_5, window_bounds = array<i64: 64, 128>}, {pipeline_mode = #tpu.pipeline_mode<synchronous>, transform_indices = @transform_6, window_bounds = array<i64: 1, 128>}, {pipeline_mode = #tpu.pipeline_mode<synchronous>, transform_indices = @transform_7, window_bounds = array<i64: 384, 128>}, {pipeline_mode = #tpu.pipeline_mode<synchronous>, transform_indices = @transform_8, window_bounds = array<i64: 1, 128>}, {pipeline_mode = #tpu.pipeline_mode<synchronous>, transform_indices = @transform_9, window_bounds = array<i64: 384, 128>}, {pipeline_mode = #tpu.pipeline_mode<synchronous>, transform_indices = @transform_10, window_bounds = array<i64: 1, 128>}, {transform_indices = @transform_11, window_bounds = array<i64: 1, 16, 128>}]} {
    %c0 = arith.constant 0 : index
    %c0_0 = arith.constant 0 : index
    %c0_1 = arith.constant 0 : index
    %0 = vector.load %arg1[%c0, %c0_0, %c0_1] : memref<1x16x64xf32, #tpu.memory_space<vmem>>, vector<1x16x64xf32>
    %1 = vector.shape_cast %0 : vector<1x16x64xf32> to vector<16x64xf32>
    %cst = arith.constant 0.000000e+00 : f32
    %2 = vector.broadcast %cst : f32 to vector<1x64xf32>
    %3 = tpu.concatenate %2, %1, %2 in 0 : vector<1x64xf32>, vector<16x64xf32>, vector<1x64xf32> -> vector<18x64xf32>
    %4 = vector.extract_strided_slice %3 {offsets = [0, 0], sizes = [16, 64], strides = [1, 1]} : vector<18x64xf32> to vector<16x64xf32>
    %5 = vector.extract_strided_slice %3 {offsets = [1, 0], sizes = [16, 64], strides = [1, 1]} : vector<18x64xf32> to vector<16x64xf32>
    %6 = vector.extract_strided_slice %3 {offsets = [2, 0], sizes = [16, 64], strides = [1, 1]} : vector<18x64xf32> to vector<16x64xf32>
    %7 = tpu.concatenate %4, %5, %6 in 1 : vector<16x64xf32>, vector<16x64xf32>, vector<16x64xf32> -> vector<16x192xf32>
    %c0_2 = arith.constant 0 : index
    %c0_3 = arith.constant 0 : index
    %8 = vector.load %arg2[%c0_2, %c0_3] : memref<192x128xf32, #tpu.memory_space<vmem>>, vector<192x128xf32>
    %cst_4 = arith.constant dense<0.000000e+00> : vector<16x128xf32>
    %9 = tpu.matmul %7, %8, %cst_4 {dimension_numbers = #tpu.dot_dimension_numbers<[1], [0], [0], [1], [0, 0, 1, 1], [], []>} : vector<16x192xf32>, vector<192x128xf32>, vector<16x128xf32> -> vector<16x128xf32>
    %c0_5 = arith.constant 0 : index
    %c0_6 = arith.constant 0 : index
    %10 = vector.load %arg3[%c0_5, %c0_6] : memref<1x128xf32, #tpu.memory_space<vmem>>, vector<1x128xf32>
    %11 = vector.broadcast %10 : vector<1x128xf32> to vector<16x128xf32>
    %12 = arith.addf %9, %11 : vector<16x128xf32>
    %cst_7 = arith.constant 0.000000e+00 : f32
    %13 = vector.broadcast %cst_7 : f32 to vector<16x128xf32>
    %14 = arith.cmpf ogt, %12, %13 : vector<16x128xf32>
    %cst_8 = arith.constant 2.000000e-01 : f32
    %15 = vector.broadcast %cst_8 : f32 to vector<16x128xf32>
    %16 = arith.mulf %15, %12 : vector<16x128xf32>
    %17 = arith.select %14, %12, %16 : vector<16x128xi1>, vector<16x128xf32>
    %cst_9 = arith.constant 0.000000e+00 : f32
    %18 = vector.broadcast %cst_9 : f32 to vector<1x128xf32>
    %19 = tpu.concatenate %18, %17, %18 in 0 : vector<1x128xf32>, vector<16x128xf32>, vector<1x128xf32> -> vector<18x128xf32>
    %20 = vector.extract_strided_slice %19 {offsets = [0, 0], sizes = [16, 128], strides = [1, 1]} : vector<18x128xf32> to vector<16x128xf32>
    %21 = vector.extract_strided_slice %19 {offsets = [1, 0], sizes = [16, 128], strides = [1, 1]} : vector<18x128xf32> to vector<16x128xf32>
    %22 = vector.extract_strided_slice %19 {offsets = [2, 0], sizes = [16, 128], strides = [1, 1]} : vector<18x128xf32> to vector<16x128xf32>
    %23 = tpu.concatenate %20, %21, %22 in 1 : vector<16x128xf32>, vector<16x128xf32>, vector<16x128xf32> -> vector<16x384xf32>
    %c0_10 = arith.constant 0 : index
    %c0_11 = arith.constant 0 : index
    %24 = vector.load %arg4[%c0_10, %c0_11] : memref<384x128xf32, #tpu.memory_space<vmem>>, vector<384x128xf32>
    %cst_12 = arith.constant dense<0.000000e+00> : vector<16x128xf32>
    %25 = tpu.matmul %23, %24, %cst_12 {dimension_numbers = #tpu.dot_dimension_numbers<[1], [0], [0], [1], [0, 0, 1, 1], [], []>} : vector<16x384xf32>, vector<384x128xf32>, vector<16x128xf32> -> vector<16x128xf32>
    %c0_13 = arith.constant 0 : index
    %c0_14 = arith.constant 0 : index
    %26 = vector.load %arg5[%c0_13, %c0_14] : memref<1x128xf32, #tpu.memory_space<vmem>>, vector<1x128xf32>
    %27 = vector.broadcast %26 : vector<1x128xf32> to vector<16x128xf32>
    %28 = arith.addf %25, %27 : vector<16x128xf32>
    %c0_15 = arith.constant 0 : index
    %c0_16 = arith.constant 0 : index
    %29 = vector.load %arg6[%c0_15, %c0_16] : memref<64x128xf32, #tpu.memory_space<vmem>>, vector<64x128xf32>
    %cst_17 = arith.constant dense<0.000000e+00> : vector<16x128xf32>
    %30 = tpu.matmul %1, %29, %cst_17 {dimension_numbers = #tpu.dot_dimension_numbers<[1], [0], [0], [1], [0, 0, 1, 1], [], []>} : vector<16x64xf32>, vector<64x128xf32>, vector<16x128xf32> -> vector<16x128xf32>
    %c0_18 = arith.constant 0 : index
    %c0_19 = arith.constant 0 : index
    %31 = vector.load %arg7[%c0_18, %c0_19] : memref<1x128xf32, #tpu.memory_space<vmem>>, vector<1x128xf32>
    %32 = vector.broadcast %31 : vector<1x128xf32> to vector<16x128xf32>
    %33 = arith.addf %30, %32 : vector<16x128xf32>
    %34 = arith.addf %28, %33 : vector<16x128xf32>
    %cst_20 = arith.constant 0.000000e+00 : f32
    %35 = vector.broadcast %cst_20 : f32 to vector<16x128xf32>
    %36 = arith.cmpf ogt, %34, %35 : vector<16x128xf32>
    %cst_21 = arith.constant 2.000000e-01 : f32
    %37 = vector.broadcast %cst_21 : f32 to vector<16x128xf32>
    %38 = arith.mulf %37, %34 : vector<16x128xf32>
    %39 = arith.select %36, %34, %38 : vector<16x128xi1>, vector<16x128xf32>
    %cst_22 = arith.constant 0.000000e+00 : f32
    %40 = vector.broadcast %cst_22 : f32 to vector<1x128xf32>
    %41 = tpu.concatenate %40, %39, %40 in 0 : vector<1x128xf32>, vector<16x128xf32>, vector<1x128xf32> -> vector<18x128xf32>
    %42 = vector.extract_strided_slice %41 {offsets = [0, 0], sizes = [16, 128], strides = [1, 1]} : vector<18x128xf32> to vector<16x128xf32>
    %43 = vector.extract_strided_slice %41 {offsets = [1, 0], sizes = [16, 128], strides = [1, 1]} : vector<18x128xf32> to vector<16x128xf32>
    %44 = vector.extract_strided_slice %41 {offsets = [2, 0], sizes = [16, 128], strides = [1, 1]} : vector<18x128xf32> to vector<16x128xf32>
    %45 = tpu.concatenate %42, %43, %44 in 1 : vector<16x128xf32>, vector<16x128xf32>, vector<16x128xf32> -> vector<16x384xf32>
    %c0_23 = arith.constant 0 : index
    %c0_24 = arith.constant 0 : index
    %46 = vector.load %arg8[%c0_23, %c0_24] : memref<384x128xf32, #tpu.memory_space<vmem>>, vector<384x128xf32>
    %cst_25 = arith.constant dense<0.000000e+00> : vector<16x128xf32>
    %47 = tpu.matmul %45, %46, %cst_25 {dimension_numbers = #tpu.dot_dimension_numbers<[1], [0], [0], [1], [0, 0, 1, 1], [], []>} : vector<16x384xf32>, vector<384x128xf32>, vector<16x128xf32> -> vector<16x128xf32>
    %c0_26 = arith.constant 0 : index
    %c0_27 = arith.constant 0 : index
    %48 = vector.load %arg9[%c0_26, %c0_27] : memref<1x128xf32, #tpu.memory_space<vmem>>, vector<1x128xf32>
    %49 = vector.broadcast %48 : vector<1x128xf32> to vector<16x128xf32>
    %50 = arith.addf %47, %49 : vector<16x128xf32>
    %cst_28 = arith.constant 0.000000e+00 : f32
    %51 = vector.broadcast %cst_28 : f32 to vector<16x128xf32>
    %52 = arith.cmpf ogt, %50, %51 : vector<16x128xf32>
    %cst_29 = arith.constant 2.000000e-01 : f32
    %53 = vector.broadcast %cst_29 : f32 to vector<16x128xf32>
    %54 = arith.mulf %53, %50 : vector<16x128xf32>
    %55 = arith.select %52, %50, %54 : vector<16x128xi1>, vector<16x128xf32>
    %cst_30 = arith.constant 0.000000e+00 : f32
    %56 = vector.broadcast %cst_30 : f32 to vector<1x128xf32>
    %57 = tpu.concatenate %56, %55, %56 in 0 : vector<1x128xf32>, vector<16x128xf32>, vector<1x128xf32> -> vector<18x128xf32>
    %58 = vector.extract_strided_slice %57 {offsets = [0, 0], sizes = [16, 128], strides = [1, 1]} : vector<18x128xf32> to vector<16x128xf32>
    %59 = vector.extract_strided_slice %57 {offsets = [1, 0], sizes = [16, 128], strides = [1, 1]} : vector<18x128xf32> to vector<16x128xf32>
    %60 = vector.extract_strided_slice %57 {offsets = [2, 0], sizes = [16, 128], strides = [1, 1]} : vector<18x128xf32> to vector<16x128xf32>
    %61 = tpu.concatenate %58, %59, %60 in 1 : vector<16x128xf32>, vector<16x128xf32>, vector<16x128xf32> -> vector<16x384xf32>
    %c0_31 = arith.constant 0 : index
    %c0_32 = arith.constant 0 : index
    %62 = vector.load %arg10[%c0_31, %c0_32] : memref<384x128xf32, #tpu.memory_space<vmem>>, vector<384x128xf32>
    %cst_33 = arith.constant dense<0.000000e+00> : vector<16x128xf32>
    %63 = tpu.matmul %61, %62, %cst_33 {dimension_numbers = #tpu.dot_dimension_numbers<[1], [0], [0], [1], [0, 0, 1, 1], [], []>} : vector<16x384xf32>, vector<384x128xf32>, vector<16x128xf32> -> vector<16x128xf32>
    %c0_34 = arith.constant 0 : index
    %c0_35 = arith.constant 0 : index
    %64 = vector.load %arg11[%c0_34, %c0_35] : memref<1x128xf32, #tpu.memory_space<vmem>>, vector<1x128xf32>
    %65 = vector.broadcast %64 : vector<1x128xf32> to vector<16x128xf32>
    %66 = arith.addf %63, %65 : vector<16x128xf32>
    %67 = arith.addf %66, %39 : vector<16x128xf32>
    %cst_36 = arith.constant 0.000000e+00 : f32
    %68 = vector.broadcast %cst_36 : f32 to vector<16x128xf32>
    %69 = arith.cmpf ogt, %67, %68 : vector<16x128xf32>
    %cst_37 = arith.constant 2.000000e-01 : f32
    %70 = vector.broadcast %cst_37 : f32 to vector<16x128xf32>
    %71 = arith.mulf %70, %67 : vector<16x128xf32>
    %72 = arith.select %69, %67, %71 : vector<16x128xi1>, vector<16x128xf32>
    %c0_38 = arith.constant 0 : index
    %c0_39 = arith.constant 0 : index
    %c0_40 = arith.constant 0 : index
    %73 = vector.load %arg12[%c0_38, %c0_39, %c0_40] : memref<1x16x128xf32, #tpu.memory_space<vmem>>, vector<1x16x128xf32>
    %74 = vector.shape_cast %73 : vector<1x16x128xf32> to vector<16x128xf32>
    %75 = vector.shape_cast %72 : vector<16x128xf32> to vector<1x16x128xf32>
    tpu.vector_store %arg12[%c0_38, %c0_39, %c0_40], %75 {strides = array<i32>} : memref<1x16x128xf32, #tpu.memory_space<vmem>>, vector<1x16x128xf32>,
    return
  }
  func.func @transform_0(%arg0: i32) -> (i32, i32, i32) {
    %c0_i32 = arith.constant 0 : i32
    %c0_i32_0 = arith.constant 0 : i32
    %c0_i32_1 = arith.constant 0 : i32
    return %arg0, %c0_i32, %c0_i32_0 : i32, i32, i32
  }
  func.func @transform_1(%arg0: i32) -> (i32, i32) {
    %c0_i32 = arith.constant 0 : i32
    %c0_i32_0 = arith.constant 0 : i32
    %c0_i32_1 = arith.constant 0 : i32
    return %c0_i32, %c0_i32_0 : i32, i32
  }
  func.func @transform_2(%arg0: i32) -> (i32, i32) {
    %c0_i32 = arith.constant 0 : i32
    %c0_i32_0 = arith.constant 0 : i32
    %c0_i32_1 = arith.constant 0 : i32
    return %c0_i32, %c0_i32_0 : i32, i32
  }
  func.func @transform_3(%arg0: i32) -> (i32, i32) {
    %c0_i32 = arith.constant 0 : i32
    %c0_i32_0 = arith.constant 0 : i32
    %c0_i32_1 = arith.constant 0 : i32
    return %c0_i32, %c0_i32_0 : i32, i32
  }
  func.func @transform_4(%arg0: i32) -> (i32, i32) {
    %c0_i32 = arith.constant 0 : i32
    %c0_i32_0 = arith.constant 0 : i32
    %c0_i32_1 = arith.constant 0 : i32
    return %c0_i32, %c0_i32_0 : i32, i32
  }
  func.func @transform_5(%arg0: i32) -> (i32, i32) {
    %c0_i32 = arith.constant 0 : i32
    %c0_i32_0 = arith.constant 0 : i32
    %c0_i32_1 = arith.constant 0 : i32
    return %c0_i32, %c0_i32_0 : i32, i32
  }
  func.func @transform_6(%arg0: i32) -> (i32, i32) {
    %c0_i32 = arith.constant 0 : i32
    %c0_i32_0 = arith.constant 0 : i32
    %c0_i32_1 = arith.constant 0 : i32
    return %c0_i32, %c0_i32_0 : i32, i32
  }
  func.func @transform_7(%arg0: i32) -> (i32, i32) {
    %c0_i32 = arith.constant 0 : i32
    %c0_i32_0 = arith.constant 0 : i32
    %c0_i32_1 = arith.constant 0 : i32
    return %c0_i32, %c0_i32_0 : i32, i32
  }
  func.func @transform_8(%arg0: i32) -> (i32, i32) {
    %c0_i32 = arith.constant 0 : i32
    %c0_i32_0 = arith.constant 0 : i32
    %c0_i32_1 = arith.constant 0 : i32
    return %c0_i32, %c0_i32_0 : i32, i32
  }
  func.func @transform_9(%arg0: i32) -> (i32, i32) {
    %c0_i32 = arith.constant 0 : i32
    %c0_i32_0 = arith.constant 0 : i32
    %c0_i32_1 = arith.constant 0 : i32
    return %c0_i32, %c0_i32_0 : i32, i32
  }
  func.func @transform_10(%arg0: i32) -> (i32, i32) {
    %c0_i32 = arith.constant 0 : i32
    %c0_i32_0 = arith.constant 0 : i32
    %c0_i32_1 = arith.constant 0 : i32
    return %c0_i32, %c0_i32_0 : i32, i32
  }
  func.func @transform_11(%arg0: i32) -> (i32, i32, i32) {
    %c0_i32 = arith.constant 0 : i32
    %c0_i32_0 = arith.constant 0 : i32
    %c0_i32_1 = arith.constant 0 : i32
    return %arg0, %c0_i32, %c0_i32_0 : i32, i32, i32
  }
}

</mosaic_0001>

<bundles_post_ra>
// kernel: tpu_custom_call.1
= control target key start
LH: loop header
LB: loop body
LE: loop exit
PB: predicated region body
PF: predicated region fallthrough
CT: control target
= control target key end

     0   :  { %s2706_s0 = inlined_call_operand.hbm [shape: f32[2,16,64], index: 0, kind: input, shape index: {}]   ;;  %s2707_s1 = inlined_call_operand.hbm [shape: f32[192,128], index: 1, kind: input, shape index: {}]   ;;  %s2708_s2 = inlined_call_operand.vmem [shape: f32[1,128], index: 2, kind: input, shape index: {}]   ;;  %s2709_s3 = inlined_call_operand.hbm [shape: f32[384,128], index: 3, kind: input, shape index: {}]   ;;  %s2710_s4 = inlined_call_operand.vmem [shape: f32[1,128], index: 4, kind: input, shape index: {}]   ;;  %s2711_s5 = inlined_call_operand.hbm [shape: f32[64,128], index: 5, kind: input, shape index: {}]   ;;  %s2712_s6 = inlined_call_operand.vmem [shape: f32[1,128], index: 6, kind: input, shape index: {}]   ;;  %s2713_s7 = inlined_call_operand.hbm [shape: f32[384,128], index: 7, kind: input, shape index: {}]   ;;  %s2714_s8 = inlined_call_operand.vmem [shape: f32[1,128], index: 8, kind: input, shape index: {}]   ;;  %s2715_s9 = inlined_call_operand.hbm [shape: f32[384,128], index: 9, kind: input, shape index: {}]   ;;  %s2716_s10 = inlined_call_operand.vmem [shape: f32[1,128], index: 10, kind: input, shape index: {}]   ;;  %s2717_s11 = inlined_call_operand.hbm [shape: f32[2,16,128], index: 11, kind: output, shape index: {}]  }
   0x1   :  { %2724 = sst [smem:[#allocation19_spill]] %s2707_s1 }
   0x2   :  { %2725 = sst [smem:[#allocation20_spill]] %s2709_s3 }
   0x3   :  { %2726 = sst [smem:[#allocation21_spill]] %s2711_s5 }
   0x4   :  { %2727 = sst [smem:[#allocation22_spill]] %s2713_s7 }
   0x5   :  { %2728 = sst [smem:[#allocation23_spill]] %s2715_s9 }
   0x6   :  { %16 = vsyncpa [#allocation3], 0 }
   0x7   :  { %18 = vsyncpa [#allocation3 + $0x1], 0 }
   0x8   :  { %19 = vsyncpa [#allocation6], 0 }
   0x9   :  { %20 = vsyncpa [#allocation9], 0 }
   0xa   :  { %21 = vsyncpa [#allocation12], 0 }
   0xb   :  { %22 = vsyncpa [#allocation4], 0 }
   0xc   :  { %24 = vsyncpa [#allocation4 + $0x1], 0  ;;  %s2331_s17 = smov 0   ;;  %s2333_s18 = smov 0  }
   0xd   :  { %s2335_s19 = smov 0   ;;  %s2337_s20 = smov 0  }
   0xe LB: > { %s2258_s21 = smov [#allocation5]   ;;  %s2352_s23 = sadd.s32 4294967295, %s2256_s20   ;;  %s2256_s20 = sphi %s2337_s20, %s2759_s20   ;;  %s2252_s19 = sphi %s2335_s19, %s2758_s19   ;;  %s2248_s18 = sphi %s2333_s18, %s2757_s18   ;;  %s2244_s17 = sphi %s2331_s17, %s2756_s17  }
   0xf   : > { %s309_s22 = sshll.u32 %s2258_s21, 4  ;;  %p1577_p0 = scmp.ge.s32.totalorder %s2256_s20, 1  ;;  %s310_s22 = int_to_ptr.vmem [resolvable:$true] %s309_s22 }
  0x10   : > { %p2720_p1 = scmp.eq.s32.totalorder %s2352_s23, 0  ;;  %p297_p2 = scmp.lt.s32.totalorder %s2256_s20, 3 }
  0x11   : > { %s2259_s25 = smov [#allocation8]   ;;  %s2260_s28 = smov [#allocation7]  }
  0x12   : > { %p2357_p3 = pnand %p1577_p0, %p297_p2  ;;  %s341_s26 = sshll.u32 %s2259_s25, 4  ;;  %s2370_s26 = int_to_ptr.vmem [resolvable:$true] %s341_s26 }
  0x13   : > { %s325_s29 = sshll.u32 %s2260_s28, 4  ;;  %s2033_s12 = scalar_lea.vmem %s310_s22, 3072  ;;  %s2372_s29 = int_to_ptr.vmem [resolvable:$true] %s325_s29 }
  0x14   : > { %s2729_s24 = scalar_select %p2357_p3, 1, 0 }
  0x15   : > { %p1943_p5 = pneg %p2357_p3  ;;  %p2034_p8 = scmp.ne.s32.totalorder %s310_s22, %s2033_s12 }
  0x16   : > { %p2041_p11 = scmp.lt.s32.totalorder %s310_s22, %s310_s22  ;;  %p2042_p12 = scmp.lt.s32.totalorder %s2033_s12, %s2033_s12 }
  0x17   : > { %p2366_p6 = pnand %p1943_p5, %p2720_p1 }
  0x18   : > { %p2043_p13 = por %p2042_p12, %p2041_p11 }
  0x19   : > { %p2376_p7 = pneg %p2366_p6 }
  0x1b   : > { %p2036_p9 = pnand %p2034_p8, %p2376_p7 }
  0x1d   : > { %p2037_p10 = pneg %p2036_p9 }
  0x1f   : > { %p2044_p0 = pnand %p2043_p13, %p2037_p10 }
  0x21   : > { %2047 = shalt.err (!%p2044_p0)
}
  0x22   : > { %s2718_s13 = smov 128   ;;  %s2719_s14 = smov 8  }
  0x23   : > { %s2732_s1 = sld [smem:[#allocation19_spill]]  ;;  %s2059_s21 = scalar_lea.vmem %s2370_s26, 1024 }
  0x24   : > { %p2060_p2 = scmp.ne.s32.totalorder %s2370_s26, %s2059_s21  ;;  %p2067_p9 = scmp.lt.s32.totalorder %s2370_s26, %s2370_s26 }
  0x25   : > { %p2068_p10 = scmp.lt.s32.totalorder %s2059_s21, %s2059_s21 }
  0x26   : > { %p2062_p5 = pnand %p2060_p2, %p2376_p7 }
  0x27   : > { %p2069_p11 = por %p2068_p10, %p2067_p9 }
  0x28   : > { %p2063_p8 = pneg %p2062_p5 }
  0x29   : > { %1946 = dma.hbm_to_vmem [thread:$0]  (!%p2366_p6), %s2732_s1, 3072, %s310_s22, [#allocation6], %s2718_s13, %s2718_s13, %s2719_s14  }
  0x2a   : > { %p2070_p12 = pnand %p2069_p11, %p2063_p8 }
  0x2c   : > { %2073 = shalt.err (!%p2070_p12)
}
  0x2d   : > { %s2733_s5 = sld [smem:[#allocation21_spill]]  ;;  %s2085_s22 = scalar_lea.vmem %s2372_s29, 6144 }
  0x2e   : > { %p2086_p13 = scmp.ne.s32.totalorder %s2372_s29, %s2085_s22  ;;  %p2093_p5 = scmp.lt.s32.totalorder %s2372_s29, %s2372_s29 }
  0x2f   : > { %p2094_p8 = scmp.lt.s32.totalorder %s2085_s22, %s2085_s22 }
  0x30   : > { %p2088_p0 = pnand %p2086_p13, %p2376_p7 }
  0x31   : > { %p2095_p9 = por %p2094_p8, %p2093_p5 }
  0x32   : > { %p2089_p2 = pneg %p2088_p0 }
  0x33   : > { %1952 = dma.hbm_to_vmem [thread:$0]  (!%p2366_p6), %s2733_s5, 1024, %s2370_s26, [#allocation9], %s2718_s13, %s2718_s13, %s2719_s14  }
  0x34   : > { %p2096_p10 = pnand %p2095_p9, %p2089_p2 }
  0x36   : > { %2099 = shalt.err (!%p2096_p10)
}
  0x37   : > { %s2734_s3 = sld [smem:[#allocation20_spill]]  ;;  %s2263_s26 = smov [#allocation10]  }
  0x38   : > { %s357_s16 = sshll.u32 %s2263_s26, 4  ;;  %s2264_s21 = smov [#allocation11]   ;;  %s358_s16 = int_to_ptr.vmem [resolvable:$true] %s357_s16 }
  0x39   : > { %s373_s25 = sshll.u32 %s2264_s21, 4  ;;  %s2111_s28 = scalar_lea.vmem %s358_s16, 6144  ;;  %s374_s25 = int_to_ptr.vmem [resolvable:$true] %s373_s25 }
  0x3a   : > { %p2112_p11 = scmp.ne.s32.totalorder %s358_s16, %s2111_s28  ;;  %p2119_p0 = scmp.lt.s32.totalorder %s358_s16, %s358_s16 }
  0x3b   : > { %p2120_p2 = scmp.lt.s32.totalorder %s2111_s28, %s2111_s28 }
  0x3c   : > { %p2114_p12 = pnand %p2112_p11, %p2376_p7 }
  0x3d   : > { %1949 = dma.hbm_to_vmem [thread:$0]  (!%p2366_p6), %s2734_s3, 6144, %s2372_s29, [#allocation6], %s2718_s13, %s2718_s13, %s2719_s14  }
  0x3e   : > { %p2115_p13 = pneg %p2114_p12  ;;  %p2121_p5 = por %p2120_p2, %p2119_p0 }
  0x40   : > { %p2122_p8 = pnand %p2121_p5, %p2115_p13 }
  0x42   : > { %2125 = shalt.err (!%p2122_p8)
}
  0x43   : > { %s2735_s7 = sld [smem:[#allocation22_spill]]  ;;  %s2137_s12 = scalar_lea.vmem %s374_s25, 6144 }
  0x44   : > { %p2138_p9 = scmp.ne.s32.totalorder %s374_s25, %s2137_s12  ;;  %p2145_p12 = scmp.lt.s32.totalorder %s374_s25, %s374_s25 }
  0x45   : > { %p2146_p0 = scmp.lt.s32.totalorder %s2137_s12, %s2137_s12 }
  0x46   : > { %p2140_p10 = pnand %p2138_p9, %p2376_p7 }
  0x47   : > { %p2147_p13 = por %p2146_p0, %p2145_p12 }
  0x48   : > { %p2141_p11 = pneg %p2140_p10 }
  0x49   : > { %1955 = dma.hbm_to_vmem [thread:$0]  (!%p2366_p6), %s2735_s7, 6144, %s358_s16, [#allocation9], %s2718_s13, %s2718_s13, %s2719_s14  }
  0x4a   : > { %p2148_p2 = pnand %p2147_p13, %p2141_p11 }
  0x4c   : > { %2151 = shalt.err (!%p2148_p2)
}
  0x4d   : > { %s2736_s9 = sld [smem:[#allocation23_spill]]  ;;  %s1576_s27 = sadd.s32 4294967294, %s2256_s20  }
  0x4e   : > { %s2442_s30 = sadd.s32 1, %s2256_s20   ;;  %s37_s16 = sadd.s32 1, %s2252_s19 }
  0x4f   : > { %s34_s21 = ssub.s32 %s2256_s20, %s2442_s30  ;;  %p44_p7 = scmp.ne.s32.totalorder %s2252_s19, %s2248_s18 }
  0x50   : > { %p35_p5 = scmp.eq.s32.totalorder %s34_s21, 0  ;;  %p45_p8 = scmp.eq.s32.totalorder %s2256_s20, 0 }
  0x51   : > { %p50_p9 = scmp.ne.s32.totalorder %s2248_s18, %s2244_s17  ;;  %p284_p10 = scmp.eq.s32.totalorder %s2352_s23, 1 }
  0x52   : > { %s2454_s28 = scalar_select %p35_p5, %s2252_s19, %s37_s16  }
  0x53   : > { %1958 = dma.hbm_to_vmem [thread:$0]  (!%p2366_p6), %s2736_s9, 6144, %s374_s25, [#allocation12], %s2718_s13, %s2718_s13, %s2719_s14  }
  0x54   : > { %p46_p11 = por %p45_p8, %p44_p7  ;;  %p2458_p12 = por %p2720_p1, %p50_p9 }
  0x55   : > { %p2462_p6 = por %p284_p10, %p44_p7  ;;  %p290_p0 = scmp.eq.s32.totalorder %s1576_s27, 1 }
  0x56   : > { %s2737_s29 = scalar_select %p2458_p12, 1, 0 }
  0x57   : > { %s2738_s25 = scalar_select %p2462_p6, 1, 0 }
  0x58   : > { %p1972_p13 = scmp.lt.s32.totalorder %s2256_s20, 2  ;;  %s390_s22 = sand.u32 1, %s2252_s19  }
  0x59   : > { %p2468_p2 = por %p290_p0, %p50_p9  ;;  %s1584_s15 = sshll.u32 %s390_s22, 4 }
  0x5a   : > { %s1615_s26 = sshll.u32 %s2256_s20, 8  ;;  %s394_s14 = scalar_lea.vmem [#allocation2], %s1584_s15 }
  0x5b   : > { %s2739_s12 = scalar_select %p2468_p2, 1, 0 }
  0x5c   : > { %s2476_s13 = scalar_lea.hbm %s2706_s0, %s1615_s26  ;;  %s401_s1 = sshll.u32 %s394_s14, 4  ;;  %s2482_s1 = int_to_ptr.vmem [resolvable:$true] %s401_s1 }
  0x5d   : > { %p2478_p7 = pnand %p1972_p13, %p46_p11  ;;  %s2484_s3 = scalar_lea.sflag [#allocation3], %s390_s22 }
  0x5e   : > { %s2152_s5 = scalar_lea.hbm %s2476_s13, 256  ;;  %s2157_s15 = scalar_lea.hbm %s2706_s0, 512 }
  0x5f   : > { %p2153_p5 = scmp.ne.s32.totalorder %s2476_s13, %s2152_s5  ;;  %p2154_p8 = pneg %p2478_p7 }
  0x60   : > { %p2158_p11 = scmp.lt.s32.totalorder %s2476_s13, %s2706_s0  ;;  %p2159_p0 = scmp.lt.s32.totalorder %s2157_s15, %s2152_s5 }
  0x61   : > { %p2155_p9 = pnand %p2154_p8, %p2153_p5 }
  0x62   : > { %p2160_p13 = por %p2159_p0, %p2158_p11 }
  0x63   : > { %p2156_p10 = pneg %p2155_p9 }
  0x65   : > { %p2161_p4 = pnand %p2160_p13, %p2156_p10 }
  0x67   : > { %2164 = shalt.err (!%p2161_p4)
}
  0x68   : > { %s2165_s22 = scalar_lea.vmem %s2482_s1, 256  ;;  %s2265_s7 = smov [#allocation2]  }
  0x69   : > { %p2166_p1 = scmp.ne.s32.totalorder %s2482_s1, %s2165_s22  ;;  %s2170_s9 = sshll.u32 %s2265_s7, 4  ;;  %s2171_s9 = int_to_ptr.vmem [resolvable:$false] %s2170_s9 }
  0x6a   : > { %s2172_s26 = scalar_lea.vmem %s2171_s9, 512  ;;  %p2173_p9 = scmp.lt.s32.totalorder %s2482_s1, %s2171_s9 }
  0x6b   : > { %p2168_p2 = pnand %p2166_p1, %p2154_p8  ;;  %p2174_p6 = scmp.lt.s32.totalorder %s2172_s26, %s2165_s22 }
  0x6d   : > { %p2169_p5 = pneg %p2168_p2  ;;  %p2175_p12 = por %p2174_p6, %p2173_p9 }
  0x6f   : > { %p2176_p3 = pnand %p2175_p12, %p2169_p5 }
  0x71   : > { %2179 = shalt.err (!%p2176_p3)
}
  0x72   : > { %s2741_s5 = smov 8   ;;  %s2742_s16 = smov 128  }
  0x73   : > { %1962 = dma.hbm_to_vmem [thread:$0]  (!%p2478_p7), %s2476_s13, 256, %s2482_s1, %s2484_s3, %s2742_s16, %s2742_s16, %s2741_s5  }
  0x74   : > { %p2743_p1 = scmp.ne.s32.totalorder %s2729_s24, 0 }
  0x75   : > { %s2511_s7 = sand.u32 (!%p2743_p1), 1, %s2248_s18   ;;  %p2744_p3 = scmp.ne.s32.totalorder (!%p2743_p1), %s2737_s29, 0 }
  0x76   : > { %413 = sbr.rel (%p2743_p1) target bundleno = 1146 (0x47a), region = 64  ;;  %s1588_s9 = sshll.u32 (!%p2743_p1), %s2511_s7, 4 }
  0x77   : > { %s416_s15 = scalar_lea.sflag (!%p2743_p1), [#allocation3], %s2511_s7  ;;  %s419_s27 = scalar_lea.vmem (!%p2743_p1), [#allocation2], %s1588_s9 }
  0x7b   : > { %2223 = dma.done.wait (%p2744_p3), %s416_s15, 256  }
  0x7c   : > { %2225 = vsyncadd (%p2744_p3), %s416_s15, 4294967040  ;;  %p2745_p4 = scmp.eq.s32.totalorder %s2352_s23, 0 }
  0x7e   : > { %2227 = dma.done.wait (%p2745_p4), [#allocation6], 9216   ;;  %p2746_p12 = pmov %p2745_p4 }
  0x7f   : > { %p2747_p6 = pmov %p2745_p4 }
  0x80   : > { %2229 = vsyncadd (%p2746_p12), [#allocation6], 4294958080 }
  0x81   : > { %2231 = dma.done.wait (%p2747_p6), [#allocation9], 7168   ;;  %p2748_p2 = pmov %p2745_p4 }
  0x83   : > { %2233 = vsyncadd (%p2748_p2), [#allocation9], 4294960128  ;;  %p2749_p7 = pmov %p2748_p2 }
  0x84   : > { %p2750_p8 = pmov %p2748_p2 }
  0x85   : > { %2235 = dma.done.wait (%p2749_p7), [#allocation12], 6144  }
  0x86   : > { %2237 = vsyncadd (%p2750_p8), [#allocation12], 4294961152  ;;  %v2266_v0 = vmov 0.0   ;;  %v2534_v1 = vld [vmem:[%s419_s27] sm:$0xff]  ;;  %v2536_v2 = vld [vmem:[%s419_s27 + $0x8] sm:$0xff]  ;;  %vm482_vm0 = vcmask 1040384  }
  0x87   : > { %549 = vmatprep.subr.mxu0 %v2266_v0  ;;  %v529_v3 = vld [vmem:[#allocation5 + $0x78] sm:$0xff]  ;;  %v483_v4 = vrot.slane %v2534_v1, 7  ;;  %v484_v5 = vrot.slane %v2536_v2, 7  ;;  %v528_v6 = vld [vmem:[#allocation5 + $0x70] sm:$0xff]  ;;  %v527_v7 = vld [vmem:[#allocation5 + $0x68] sm:$0xff]  ;;  %vm493_vm1 = vcmask 1046528  }
  0x88   : > { %550 = vmatpush1.msra.mxu0 %v529_v3  ;;  %v526_v14 = vld [vmem:[#allocation5 + $0x60] sm:$0xff]  ;;  %vm505_vm2 = vcmask 1045504   ;;  %vm511_vm3 = vcmask 523264   ;;  %v525_v19 = vld [vmem:[#allocation5 + $0x58] sm:$0xff]  ;;  %s2267_s1 = smov 64   ;;  %v524_v23 = vld [vmem:[#allocation5 + $0x50] sm:$0xff] }
  0x89   : > { %551 = vmatprep.subr.mxu0 %v2266_v0  ;;  %v2542_v8 = vsel %vm482_vm0, %v483_v4, %v484_v5  ;;  %v2545_v9 = vsel %vm482_vm0, 0.0, %v483_v4  ;;  %v490_v10 = vsel %vm482_vm0, %v484_v5, 0.0  ;;  %v687_v24 = vld [vmem:[#allocation7 + $0xf8] sm:$0xff]  ;;  %v686_v26 = vld [vmem:[#allocation7 + $0xf0] sm:$0xff]  ;;  %v523_v27 = vld [vmem:[#allocation5 + $0x48] sm:$0xff]  ;;  %s477_s15 = scalar_lea.vmem [#allocation13], %s1588_s9 }
  0x8a   : > { %552 = vmatpush1.msra.mxu0 %v528_v6  ;;  %v494_v11 = vrot.slane %v2545_v9, 1  ;;  %v495_v12 = vrot.slane %v2542_v8, 1  ;;  %v497_v13 = vrot.slane %v490_v10, 1  ;;  %v506_v15 = vrot.slane %v2545_v9, 2  ;;  %1617 = vmatprep.subr.mxu1 %v687_v24  ;;  %v671_v25 = vld [vmem:[#allocation7 + $0x78] sm:$0xff]  ;;  %v670_v28 = vld [vmem:[#allocation7 + $0x70] sm:$0xff]  ;;  %vm2604_vm6 = vmneg %vm482_vm0 }
  0x8b   : > { %553 = vmatprep.subr.mxu0 %v2266_v0  ;;  %v507_v16 = vrot.slane %v2542_v8, 2  ;;  %v509_v17 = vrot.slane %v490_v10, 2  ;;  %1618 = vmatpush3.msra.mxu1 %v671_v25  ;;  %v685_v29 = vld [vmem:[#allocation7 + $0xe8] sm:$0xff]  ;;  %v522_v30 = vld [vmem:[#allocation5 + $0x40] sm:$0xff]  ;;  %v521_v33 = vld [vmem:[#allocation5 + $0x38] sm:$0xff]  ;;  %s1455_s27 = sshll.u32 %s477_s15, 4  ;;  %s2658_s27 = int_to_ptr.vmem [resolvable:$true] %s1455_s27 }
  0x8c   : > { %554 = vmatpush1.msra.mxu0 %v527_v7  ;;  %v496_v18 = vsel %vm493_vm1, %v494_v11, %v495_v12  ;;  %v498_v22 = vsel %vm493_vm1, %v495_v12, %v497_v13  ;;  %1619 = vmatprep.subr.mxu1 %v686_v26  ;;  %v669_v31 = vld [vmem:[#allocation7 + $0x68] sm:$0xff]  ;;  %v684_v32 = vld [vmem:[#allocation7 + $0xe0] sm:$0xff]  ;;  %v683_v35 = vld [vmem:[#allocation7 + $0xd8] sm:$0xff]  ;;  %s1442_s9 = scalar_lea.sflag [#allocation4], %s2511_s7  ;;  %p2753_p11 = scmp.ne.s32.totalorder %s2738_s25, 0 }
  0x8d   : > { %555 = vmatprep.subr.mxu0 %v2266_v0  ;;  %499 = vrot.lane.b32.xlu0 %v496_v18, %s2267_s1  ;;  %v508_v20 = vsel %vm505_vm2, %v506_v15, %v507_v16  ;;  %v2557_v21 = vsel %vm505_vm2, %v507_v16, %v509_v17  ;;  %v668_v34 = vld [vmem:[#allocation7 + $0x60] sm:$0xff]  ;;  %v520_v36 = vld [vmem:[#allocation5 + $0x30] sm:$0xff]  ;;  %v667_v37 = vld [vmem:[#allocation7 + $0x58] sm:$0xff]  ;;  %s2268_s29 = smov [#allocation13]  }
  0x8e   : > { %556 = vmatpush1.msra.mxu0 %v526_v14  ;;  %1596 = vmatprep.mubr.msk.f32.mxu0 %vm511_vm3, %v508_v20  ;;  %v682_v38 = vld [vmem:[#allocation7 + $0xd0] sm:$0xff]  ;;  %v519_v39 = vld [vmem:[#allocation5 + $0x28] sm:$0xff]  ;;  %v518_v42 = vld [vmem:[#allocation5 + $0x20] sm:$0xff]  ;;  %s2184_s14 = sshll.u32 %s2268_s29, 4  ;;  %s2185_s14 = int_to_ptr.vmem [resolvable:$false] %s2184_s14 }
  0x8f   : > { %557 = vmatprep.subr.mxu0 %v2266_v0  ;;  %1620 = vmatpush3.msra.mxu1 %v670_v28  ;;  %v666_v40 = vld [vmem:[#allocation7 + $0x50] sm:$0xff]  ;;  %v681_v41 = vld [vmem:[#allocation7 + $0xc8] sm:$0xff]  ;;  %v680_v44 = vld [vmem:[#allocation7 + $0xc0] sm:$0xff]  ;;  %s2186_s21 = scalar_lea.vmem %s2185_s14, 512  ;;  %p2187_p5 = scmp.lt.s32.totalorder %s2658_s27, %s2185_s14 }
  0x90   : > { %558 = vmatpush1.msra.mxu0 %v525_v19  ;;  %1621 = vmatprep.subr.mxu1 %v685_v29  ;;  %v665_v43 = vld [vmem:[#allocation7 + $0x48] sm:$0xff]  ;;  %v517_v45 = vld [vmem:[#allocation5 + $0x18] sm:$0xff]  ;;  %v664_v46 = vld [vmem:[#allocation7 + $0x40] sm:$0xff] }
  0x91   : > { %559 = vmatprep.subr.mxu0 %v2266_v0  ;;  %501 = vrot.lane.b32.xlu0 %v498_v22, %s2267_s1  ;;  %v516_v47 = vld [vmem:[#allocation5 + $0x10] sm:$0xff]  ;;  %v515_v48 = vld [vmem:[#allocation5 + $0x8] sm:$0xff]  ;;  %v514_v49 = vld [vmem:[#allocation5] sm:$0xff]  ;;  %s1616_s1 = sshll.u32 %s2352_s23, 8  ;;  %s2180_s23 = scalar_lea.vmem %s2658_s27, 256 }
  0x92   : > { %560 = vmatpush1.msra.mxu0 %v524_v23  ;;  %1622 = vmatpush3.msra.mxu1 %v669_v31  ;;  %v537_v50 = vld [vmem:[#allocation5 + $0xb8] sm:$0xff]  ;;  %v536_v51 = vld [vmem:[#allocation5 + $0xb0] sm:$0xff]  ;;  %v535_v52 = vld [vmem:[#allocation5 + $0xa8] sm:$0xff]  ;;  %s2663_s13 = scalar_lea.hbm %s2717_s11, %s1616_s1  ;;  %p2181_p10 = scmp.ne.s32.totalorder %s2658_s27, %s2180_s23 }
  0x93   : > { %561 = vmatprep.subr.mxu0 %v2266_v0  ;;  %1623 = vmatprep.subr.mxu1 %v684_v32  ;;  %v534_v53 = vld [vmem:[#allocation5 + $0xa0] sm:$0xff]  ;;  %v533_v54 = vld [vmem:[#allocation5 + $0x98] sm:$0xff]  ;;  %v532_v55 = vld [vmem:[#allocation5 + $0x90] sm:$0xff]  ;;  %p2188_p9 = scmp.lt.s32.totalorder %s2186_s21, %s2180_s23 }
  0x94   : > { %562 = vmatpush1.msra.mxu0 %v523_v27  ;;  %1624 = vmatpush3.msra.mxu1 %v668_v34  ;;  %v531_v56 = vld [vmem:[#allocation5 + $0x88] sm:$0xff]  ;;  %v530_v57 = vld [vmem:[#allocation5 + $0x80] sm:$0xff]  ;;  %v679_v62 = vld [vmem:[#allocation7 + $0xb8] sm:$0xff]  ;;  %p2182_p0 = pnand %p2181_p10, %p2753_p11 }
  0x95   : > { %563 = vmatprep.subr.mxu0 %v2266_v0  ;;  %1625 = vmatprep.subr.mxu1 %v683_v35  ;;  %v663_v63 = vld [vmem:[#allocation7 + $0x38] sm:$0xff]  ;;  %v662_v3 = vld [vmem:[#allocation7 + $0x30] sm:$0xff]  ;;  %v677_v4 = vld [vmem:[#allocation7 + $0xa8] sm:$0xff]  ;;  %p2189_p1 = por %p2188_p9, %p2187_p5 }
  0x96   : > { %564 = vmatpush1.msra.mxu0 %v522_v30  ;;  %1626 = vmatpush3.msra.mxu1 %v667_v37  ;;  %v661_v5 = vld [vmem:[#allocation7 + $0x28] sm:$0xff]  ;;  %v676_v6 = vld [vmem:[#allocation7 + $0xa0] sm:$0xff]  ;;  %v658_v10 = vld [vmem:[#allocation7 + $0x10] sm:$0xff]  ;;  %p2183_p13 = pneg %p2182_p0 }
  0x97   : > { %565 = vmatprep.subr.mxu0 %v2266_v0  ;;  %1627 = vmatprep.subr.mxu1 %v682_v38  ;;  %v660_v7 = vld [vmem:[#allocation7 + $0x20] sm:$0xff]  ;;  %v673_v11 = vld [vmem:[#allocation7 + $0x88] sm:$0xff]  ;;  %v703_v15 = vld [vmem:[#allocation7 + $0x178] sm:$0xff] }
  0x98   : > { %566 = vmatpush1.msra.mxu0 %v521_v33  ;;  %1628 = vmatpush3.msra.mxu1 %v666_v40  ;;  %v657_v12 = vld [vmem:[#allocation7 + $0x8] sm:$0xff]  ;;  %v672_v13 = vld [vmem:[#allocation7 + $0x80] sm:$0xff]  ;;  %v868_v16 = vld [vmem:[#allocation8 + $0x38] sm:$0xff]  ;;  %p2190_p3 = pnand %p2189_p1, %p2183_p13 }
  0x99   : > { %567 = vmatprep.subr.mxu0 %v2266_v0  ;;  %1629 = vmatprep.subr.mxu1 %v681_v41  ;;  %v656_v14 = vld [vmem:[#allocation7] sm:$0xff]  ;;  %v867_v17 = vld [vmem:[#allocation8 + $0x30] sm:$0xff]  ;;  %v866_v18 = vld [vmem:[#allocation8 + $0x28] sm:$0xff] }
  0x9a   : > { %568 = vmatpush1.msra.mxu0 %v520_v36  ;;  %1630 = vmatpush3.msra.mxu1 %v665_v43  ;;  %v865_v19 = vld [vmem:[#allocation8 + $0x20] sm:$0xff]  ;;  %v864_v20 = vld [vmem:[#allocation8 + $0x18] sm:$0xff]  ;;  %v862_v22 = vld [vmem:[#allocation8 + $0x8] sm:$0xff] }
  0x9b   : > { %569 = vmatprep.subr.mxu0 %v2266_v0  ;;  %1631 = vmatprep.subr.mxu1 %v680_v44  ;;  %v861_v23 = vld [vmem:[#allocation8] sm:$0xff]  ;;  %v702_v44 = vld [vmem:[#allocation7 + $0x170] sm:$0xff] }
  0x9c   : > { %570 = vmatpush1.msra.mxu0 %v519_v39  ;;  %1632 = vmatpush3.msra.mxu1 %v664_v46  ;;  %v1595_v24 = vld [vmem:[%s2708_s2] ss:$0 sm:$0xff] }
  0x9d   : > { %571 = vmatprep.subr.mxu0 %v2266_v0  ;;  %1633 = vmatprep.subr.mxu1 %v679_v62 }
  0x9e   : > { %572 = vmatpush1.msra.mxu0 %v518_v42  ;;  %1634 = vmatpush3.msra.mxu1 %v663_v63  ;;  %v688_v63 = vld [vmem:[#allocation7 + $0x100] sm:$0xff] }
  0x9f   : > { %573 = vmatprep.subr.mxu0 %v2266_v0 }
  0xa0   : > { %574 = vmatpush1.msra.mxu0 %v517_v45 }
  0xa1   : > { %575 = vmatprep.subr.mxu0 %v2266_v0 }
  0xa2   : > { %576 = vmatpush1.msra.mxu0 %v516_v47  ;;  %v701_v47 = vld [vmem:[#allocation7 + $0x168] sm:$0xff] }
  0xa3   : > { %577 = vmatprep.subr.mxu0 %v2266_v0 }
  0xa4   : > { %578 = vmatpush1.msra.mxu0 %v515_v48 }
  0xa5   : > { %579 = vmatprep.subr.mxu0 %v2266_v0 }
  0xa6   : > { %580 = vmatpush1.msra.mxu0 %v514_v49  ;;  %v700_v49 = vld [vmem:[#allocation7 + $0x160] sm:$0xff] }
  0xa7   : > { %597 = vmatprep.subr.mxu0 %v2266_v0 }
  0xa8   : > { %598 = vmatpush2.msra.mxu0 %v537_v50 }
  0xa9   : > { %599 = vmatprep.subr.mxu0 %v2266_v0 }
  0xaa   : > { %600 = vmatpush2.msra.mxu0 %v536_v51  ;;  %v699_v51 = vld [vmem:[#allocation7 + $0x158] sm:$0xff] }
  0xab   : > { %601 = vmatprep.subr.mxu0 %v2266_v0 }
  0xac   : > { %602 = vmatpush2.msra.mxu0 %v535_v52  ;;  %v698_v52 = vld [vmem:[#allocation7 + $0x150] sm:$0xff] }
  0xad   : > { %603 = vmatprep.subr.mxu0 %v2266_v0 }
  0xae   : > { %604 = vmatpush2.msra.mxu0 %v534_v53  ;;  %v697_v53 = vld [vmem:[#allocation7 + $0x148] sm:$0xff] }
  0xaf   : > { %605 = vmatprep.subr.mxu0 %v2266_v0 }
  0xb0   : > { %606 = vmatpush2.msra.mxu0 %v533_v54  ;;  %v696_v54 = vld [vmem:[#allocation7 + $0x140] sm:$0xff] }
  0xb1   : > { %607 = vmatprep.subr.mxu0 %v2266_v0 }
  0xb2   : > { %608 = vmatpush2.msra.mxu0 %v532_v55  ;;  %v695_v55 = vld [vmem:[#allocation7 + $0x138] sm:$0xff] }
  0xb3   : > { %609 = vmatprep.subr.mxu0 %v2266_v0 }
  0xb4   : > { %610 = vmatpush2.msra.mxu0 %v531_v56  ;;  %v694_v56 = vld [vmem:[#allocation7 + $0x130] sm:$0xff] }
  0xb5   : > { %611 = vmatprep.subr.mxu0 %v2266_v0  ;;  %v678_v0 = vld [vmem:[#allocation7 + $0xb0] sm:$0xff] }
  0xb6   : > { %612 = vmatpush2.msra.mxu0 %v530_v57  ;;  %1635 = vmatprep.subr.mxu1 %v678_v0  ;;  %v693_v57 = vld [vmem:[#allocation7 + $0x128] sm:$0xff] }
  0xb7   : > { %1636 = vmatpush3.msra.mxu1 %v662_v3  ;;  %1830 = vmatprep.subr.mxu0 %v868_v16  ;;  %v1020_v3 = vld [vmem:[#allocation10 + $0xf8] sm:$0xff] }
  0xb8   : > { %1637 = vmatprep.subr.mxu1 %v677_v4  ;;  %v1036_v4 = vld [vmem:[#allocation10 + $0x178] sm:$0xff] }
  0xb9   : > { %1638 = vmatpush3.msra.mxu1 %v661_v5  ;;  %v1004_v5 = vld [vmem:[#allocation10 + $0x78] sm:$0xff] }
  0xba   : > { %1639 = vmatprep.subr.mxu1 %v676_v6  ;;  %v1019_v6 = vld [vmem:[#allocation10 + $0xf0] sm:$0xff] }
  0xbb   : > { %1640 = vmatpush3.msra.mxu1 %v660_v7  ;;  %v1035_v7 = vld [vmem:[#allocation10 + $0x170] sm:$0xff] }
  0xff   : > { %v500_v58 = vpop.permute.xlu0 %499 }
 0x100   : > { %v512_v59 = vsel %vm511_vm3, %v2545_v9, %v500_v58  ;;  %v659_v9 = vld [vmem:[#allocation7 + $0x18] sm:$0xff]  ;;  %v692_v58 = vld [vmem:[#allocation7 + $0x120] sm:$0xff] }
 0x101   : > { %614 = vmatmul.mubr.f32.vlgmr.msra.gmra.mxu0 %v512_v59  ;;  %v691_v59 = vld [vmem:[#allocation7 + $0x118] sm:$0xff] }
 0x102   : > { %1597 = vmatprep.mubr.msk.f32.mxu0 %vm511_vm3, %v2557_v21  ;;  %1831 = vmatpush3.msra.mxu0 %v868_v16  ;;  %v863_v21 = vld [vmem:[#allocation8 + $0x10] sm:$0xff]  ;;  %v1000_v16 = vld [vmem:[#allocation10 + $0x58] sm:$0xff] }
 0x103   : > { %v502_v60 = vpop.permute.xlu0 %501  ;;  %1832 = vmatprep.subr.mxu0 %v867_v17 }
 0x104   : > { %v513_v61 = vsel %vm511_vm3, %v2542_v8, %v502_v60  ;;  %v675_v8 = vld [vmem:[#allocation7 + $0x98] sm:$0xff]  ;;  %1833 = vmatpush3.msra.mxu0 %v867_v17  ;;  %v690_v60 = vld [vmem:[#allocation7 + $0x110] sm:$0xff] }
 0x105   : > { %619 = vmatmul.mubr.f32.gmra.mxu0 %v513_v61  ;;  %1641 = vmatprep.subr.mxu1 %v675_v8  ;;  %v689_v61 = vld [vmem:[#allocation7 + $0x108] sm:$0xff]  ;;  %v1003_v8 = vld [vmem:[#allocation10 + $0x70] sm:$0xff] }
 0x106   : > { %1846 = vmatprep.mubr.msk.f32.mxu0 %vm511_vm3, %v2534_v1  ;;  %1642 = vmatpush3.msra.mxu1 %v659_v9  ;;  %v674_v1 = vld [vmem:[#allocation7 + $0x90] sm:$0xff]  ;;  %v1018_v9 = vld [vmem:[#allocation10 + $0xe8] sm:$0xff] }
 0x107   : > { %1643 = vmatprep.subr.mxu1 %v674_v1  ;;  %1834 = vmatprep.subr.mxu0 %v866_v18  ;;  %v1034_v1 = vld [vmem:[#allocation10 + $0x168] sm:$0xff]  ;;  %v1015_v17 = vld [vmem:[#allocation10 + $0xd0] sm:$0xff] }
 0x108   : > { %1644 = vmatpush3.msra.mxu1 %v658_v10  ;;  %1835 = vmatpush3.msra.mxu0 %v866_v18  ;;  %v1002_v10 = vld [vmem:[#allocation10 + $0x68] sm:$0xff]  ;;  %v1031_v18 = vld [vmem:[#allocation10 + $0x150] sm:$0xff] }
 0x109   : > { %1645 = vmatprep.subr.mxu1 %v673_v11  ;;  %1836 = vmatprep.subr.mxu0 %v865_v19  ;;  %v1017_v11 = vld [vmem:[#allocation10 + $0xe0] sm:$0xff] }
 0x10a   : > { %1646 = vmatpush3.msra.mxu1 %v657_v12  ;;  %1837 = vmatpush3.msra.mxu0 %v865_v19  ;;  %v1033_v12 = vld [vmem:[#allocation10 + $0x160] sm:$0xff]  ;;  %v999_v19 = vld [vmem:[#allocation10 + $0x50] sm:$0xff] }
 0x10b   : > { %1647 = vmatprep.subr.mxu1 %v672_v13  ;;  %1838 = vmatprep.subr.mxu0 %v864_v20  ;;  %v1001_v13 = vld [vmem:[#allocation10 + $0x60] sm:$0xff] }
 0x10c   : > { %1648 = vmatpush3.msra.mxu1 %v656_v14  ;;  %1839 = vmatpush3.msra.mxu0 %v864_v20  ;;  %v1016_v14 = vld [vmem:[#allocation10 + $0xd8] sm:$0xff]  ;;  %v1014_v20 = vld [vmem:[#allocation10 + $0xc8] sm:$0xff] }
 0x10d   : > { %1795 = vmatprep.subr.mxu1 %v703_v15  ;;  %1840 = vmatprep.subr.mxu0 %v863_v21 }
 0x10e   : > { %1841 = vmatpush3.msra.mxu0 %v863_v21  ;;  %v1030_v21 = vld [vmem:[#allocation10 + $0x148] sm:$0xff] }
 0x10f   : > { %1842 = vmatprep.subr.mxu0 %v862_v22 }
 0x110   : > { %1843 = vmatpush3.msra.mxu0 %v862_v22  ;;  %v998_v22 = vld [vmem:[#allocation10 + $0x48] sm:$0xff] }
 0x111   : > { %1844 = vmatprep.subr.mxu0 %v861_v23 }
 0x112   : > { %1845 = vmatpush3.msra.mxu0 %v861_v23  ;;  %v1013_v23 = vld [vmem:[#allocation10 + $0xc0] sm:$0xff] }
 0x113   : > { %1847 = vmatmul.mubr.msk.f32.vlgmr.msra.gmra.mxu0 %vm511_vm3, %v2536_v2  ;;  %1683 = vmatprep.subr.mxu0 %v1020_v3 }
 0x114   : > { %1684 = vmatpush3.msra.mxu0 %v1004_v5 }
 0x115   : > { %1685 = vmatprep.subr.mxu0 %v1019_v6 }
 0x116   : > { %1686 = vmatpush3.msra.mxu0 %v1003_v8 }
 0x117   : > { %1687 = vmatprep.subr.mxu0 %v1018_v9 }
 0x118   : > { %1688 = vmatpush3.msra.mxu0 %v1002_v10 }
 0x119   : > { %1689 = vmatprep.subr.mxu0 %v1017_v11 }
 0x11a   : > { %1690 = vmatpush3.msra.mxu0 %v1001_v13 }
 0x11b   : > { %1691 = vmatprep.subr.mxu0 %v1016_v14 }
 0x11c   : > { %1692 = vmatpush3.msra.mxu0 %v1000_v16 }
 0x11d   : > { %1693 = vmatprep.subr.mxu0 %v1015_v17 }
 0x11e   : > { %1694 = vmatpush3.msra.mxu0 %v999_v19 }
 0x11f   : > { %1695 = vmatprep.subr.mxu0 %v1014_v20 }
 0x120   : > { %1696 = vmatpush3.msra.mxu0 %v998_v22 }
 0x121   : > { %1697 = vmatprep.subr.mxu0 %v1013_v23 }
 0x1c1   : > { %v615_v25 = vpop.f32.mrf.mxu0 }
 0x1c2   : > { %v616_v26 = vadd.f32 %v1595_v24, %v615_v25  ;;  %v997_v25 = vld [vmem:[#allocation10 + $0x40] sm:$0xff] }
 0x1c3   : > { %v617_v27 = vpop.f32.mrf.mxu0  ;;  %1698 = vmatpush3.msra.mxu0 %v997_v25 }
 0x1c4   : > { %vm624_vm4 = vcmp.gt.f32.partialorder %v616_v26, 0.0  ;;  %v626_v28 = vmul.f32 0.2, %v616_v26  ;;  %v1028_v27 = vld [vmem:[#allocation10 + $0x138] sm:$0xff] }
 0x1c5   : > { %v620_v29 = vpop.f32.mrf.mxu0 }
 0x1c6   : > { %v628_v30 = vsel %vm624_vm4, %v616_v26, %v626_v28  ;;  %v621_v31 = vadd.f32 %v1595_v24, %v620_v29  ;;  %v1029_v24 = vld [vmem:[#allocation10 + $0x140] sm:$0xff]  ;;  %v1012_v26 = vld [vmem:[#allocation10 + $0xb8] sm:$0xff]  ;;  %v1011_v29 = vld [vmem:[#allocation10 + $0xb0] sm:$0xff] }
 0x1c7   : > { %v632_v32 = vrot.slane %v628_v30, 7  ;;  %v622_v33 = vpop.f32.mrf.mxu0  ;;  %1699 = vmatprep.subr.mxu0 %v1012_v26  ;;  %v996_v28 = vld [vmem:[#allocation10 + $0x38] sm:$0xff]  ;;  %v1027_v30 = vld [vmem:[#allocation10 + $0x130] sm:$0xff] }
 0x1c8   : > { %vm625_vm5 = vcmp.gt.f32.partialorder %v621_v31, 0.0  ;;  %v627_v34 = vmul.f32 0.2, %v621_v31  ;;  %1700 = vmatpush3.msra.mxu0 %v996_v28  ;;  %v1026_v33 = vld [vmem:[#allocation10 + $0x128] sm:$0xff]  ;;  %v1256_v28 = vld [vmem:[#allocation11 + $0xf0] sm:$0xff] }
 0x1c9   : > { %v638_v2 = vsel %vm482_vm0, 0.0, %v632_v32  ;;  %1701 = vmatprep.subr.mxu0 %v1011_v29 }
 0x1ca   : > { %v629_v35 = vsel %vm625_vm5, %v621_v31, %v627_v34  ;;  %v642_v39 = vrot.slane %v638_v2, 1  ;;  %v649_v48 = vrot.slane %v638_v2, 2  ;;  %v995_v31 = vld [vmem:[#allocation10 + $0x30] sm:$0xff]  ;;  %v994_v34 = vld [vmem:[#allocation10 + $0x28] sm:$0xff]  ;;  %v993_v2 = vld [vmem:[#allocation10 + $0x20] sm:$0xff] }
 0x1cb   : > { %v633_v36 = vrot.slane %v629_v35, 7  ;;  %1702 = vmatpush3.msra.mxu0 %v995_v31  ;;  %v1009_v35 = vld [vmem:[#allocation10 + $0xa0] sm:$0xff]  ;;  %v1240_v31 = vld [vmem:[#allocation11 + $0x70] sm:$0xff] }
 0x1cd   : > { %v2596_v37 = vsel %vm482_vm0, %v632_v32, %v633_v36  ;;  %v2599_v38 = vsel %vm482_vm0, %v633_v36, 0.0  ;;  %v1025_v36 = vld [vmem:[#allocation10 + $0x120] sm:$0xff] }
 0x1ce   : > { %v643_v40 = vrot.slane %v2596_v37, 1  ;;  %v645_v41 = vrot.slane %v2599_v38, 1  ;;  %v650_v46 = vrot.slane %v2596_v37, 2  ;;  %v652_v62 = vrot.slane %v2599_v38, 2  ;;  %v1024_v38 = vld [vmem:[#allocation10 + $0x118] sm:$0xff] }
 0x1d0   : > { %v644_v43 = vsel %vm493_vm1, %v642_v39, %v643_v40  ;;  %v646_v45 = vsel %vm493_vm1, %v643_v40, %v645_v41  ;;  %v651_v50 = vsel %vm505_vm2, %v649_v48, %v650_v46  ;;  %v653_v0 = vsel %vm505_vm2, %v650_v46, %v652_v62  ;;  %v992_v39 = vld [vmem:[#allocation10 + $0x18] sm:$0xff]  ;;  %v1007_v40 = vld [vmem:[#allocation10 + $0x90] sm:$0xff]  ;;  %v990_v46 = vld [vmem:[#allocation10 + $0x8] sm:$0xff] }
 0x1d1   : > { %775 = vmatprep.mubr.f32.mxu1 %v644_v43  ;;  %v1023_v41 = vld [vmem:[#allocation10 + $0x110] sm:$0xff]  ;;  %v1021_v48 = vld [vmem:[#allocation10 + $0x100] sm:$0xff] }
 0x1d2   : > { %1600 = vmatmul.mubr.msk.f32.vlgmr.msra.gmra.mxu1 %vm2604_vm6, %v632_v32  ;;  %v1010_v32 = vld [vmem:[#allocation10 + $0xa8] sm:$0xff]  ;;  %v991_v43 = vld [vmem:[#allocation10 + $0x10] sm:$0xff] }
 0x1d3   : > { %1796 = vmatpush3.msra.mxu1 %v703_v15  ;;  %780 = vmatprep.mubr.f32.mxu1 %v646_v45  ;;  %v1032_v15 = vld [vmem:[#allocation10 + $0x158] sm:$0xff]  ;;  %v1022_v45 = vld [vmem:[#allocation10 + $0x108] sm:$0xff] }
 0x1d4   : > { %1797 = vmatprep.subr.mxu1 %v702_v44  ;;  %1703 = vmatprep.subr.mxu0 %v1010_v32  ;;  %v1255_v32 = vld [vmem:[#allocation11 + $0xe8] sm:$0xff] }
 0x1d5   : > { %1798 = vmatpush3.msra.mxu1 %v702_v44  ;;  %1704 = vmatpush3.msra.mxu0 %v994_v34  ;;  %v1006_v44 = vld [vmem:[#allocation10 + $0x88] sm:$0xff] }
 0x1d6   : > { %1799 = vmatprep.subr.mxu1 %v701_v47  ;;  %781 = vmatmul.mubr.f32.gmra.mxu1 %v2596_v37  ;;  %v1008_v37 = vld [vmem:[#allocation10 + $0x98] sm:$0xff]  ;;  %v1239_v34 = vld [vmem:[#allocation11 + $0x68] sm:$0xff] }
 0x1d7   : > { %1800 = vmatpush3.msra.mxu1 %v701_v47  ;;  %1827 = vmatprep.mubr.f32.mxu1 %v651_v50  ;;  %v1005_v47 = vld [vmem:[#allocation10 + $0x80] sm:$0xff]  ;;  %v1257_v50 = vld [vmem:[#allocation11 + $0xf8] sm:$0xff] }
 0x1d8   : > { %1801 = vmatprep.subr.mxu1 %v700_v49  ;;  %1705 = vmatprep.subr.mxu0 %v1009_v35  ;;  %v1254_v35 = vld [vmem:[#allocation11 + $0xe0] sm:$0xff] }
 0x1d9   : > { %1802 = vmatpush3.msra.mxu1 %v700_v49  ;;  %1706 = vmatpush3.msra.mxu0 %v993_v2  ;;  %v989_v49 = vld [vmem:[#allocation10] sm:$0xff] }
 0x1da   : > { %1803 = vmatprep.subr.mxu1 %v699_v51  ;;  %1707 = vmatprep.subr.mxu0 %v1008_v37  ;;  %v1238_v2 = vld [vmem:[#allocation11 + $0x60] sm:$0xff]  ;;  %v1253_v37 = vld [vmem:[#allocation11 + $0xd8] sm:$0xff] }
 0x1db   : > { %1804 = vmatpush3.msra.mxu1 %v699_v51  ;;  %1708 = vmatpush3.msra.mxu0 %v992_v39  ;;  %v1273_v51 = vld [vmem:[#allocation11 + $0x178] sm:$0xff] }
 0x1dc   : > { %1805 = vmatprep.subr.mxu1 %v698_v52  ;;  %1709 = vmatprep.subr.mxu0 %v1007_v40  ;;  %v1237_v39 = vld [vmem:[#allocation11 + $0x58] sm:$0xff]  ;;  %v1252_v40 = vld [vmem:[#allocation11 + $0xd0] sm:$0xff] }
 0x1dd   : > { %1806 = vmatpush3.msra.mxu1 %v698_v52  ;;  %1710 = vmatpush3.msra.mxu0 %v991_v43  ;;  %v1236_v43 = vld [vmem:[#allocation11 + $0x50] sm:$0xff] }
 0x1de   : > { %1807 = vmatprep.subr.mxu1 %v697_v53  ;;  %1711 = vmatprep.subr.mxu0 %v1006_v44  ;;  %v1251_v44 = vld [vmem:[#allocation11 + $0xc8] sm:$0xff] }
 0x1df   : > { %1808 = vmatpush3.msra.mxu1 %v697_v53  ;;  %1712 = vmatpush3.msra.mxu0 %v990_v46  ;;  %v1235_v46 = vld [vmem:[#allocation11 + $0x48] sm:$0xff] }
 0x1e0   : > { %1809 = vmatprep.subr.mxu1 %v696_v54  ;;  %1713 = vmatprep.subr.mxu0 %v1005_v47  ;;  %v1250_v47 = vld [vmem:[#allocation11 + $0xc0] sm:$0xff] }
 0x1e1   : > { %1810 = vmatpush3.msra.mxu1 %v696_v54  ;;  %1714 = vmatpush3.msra.mxu0 %v989_v49  ;;  %v1234_v49 = vld [vmem:[#allocation11 + $0x40] sm:$0xff] }
 0x1e2   : > { %1811 = vmatprep.subr.mxu1 %v695_v55  ;;  %1739 = vmatprep.subr.mxu0 %v1257_v50  ;;  %v1249_v50 = vld [vmem:[#allocation11 + $0xb8] sm:$0xff] }
 0x1e3   : > { %1812 = vmatpush3.msra.mxu1 %v695_v55 }
 0x1e4   : > { %1813 = vmatprep.subr.mxu1 %v694_v56 }
 0x1e5   : > { %1814 = vmatpush3.msra.mxu1 %v694_v56 }
 0x1e6   : > { %1815 = vmatprep.subr.mxu1 %v693_v57 }
 0x1e7   : > { %1816 = vmatpush3.msra.mxu1 %v693_v57  ;;  %v1848_v57 = vpop.f32.mrf.mxu0 }
 0x1e8   : > { %1817 = vmatprep.subr.mxu1 %v692_v58 }
 0x1e9   : > { %1818 = vmatpush3.msra.mxu1 %v692_v58  ;;  %v1601_v58 = vld [vmem:[%s2712_s6] ss:$0 sm:$0xff] }
 0x1ea   : > { %1819 = vmatprep.subr.mxu1 %v691_v59 }
 0x1eb   : > { %1820 = vmatpush3.msra.mxu1 %v691_v59 }
 0x1ec   : > { %1821 = vmatprep.subr.mxu1 %v690_v60 }
 0x1ed   : > { %1822 = vmatpush3.msra.mxu1 %v690_v60  ;;  %v1598_v60 = vld [vmem:[%s2710_s4] ss:$0 sm:$0xff] }
 0x1ee   : > { %1823 = vmatprep.subr.mxu1 %v689_v61 }
 0x1ef   : > { %1824 = vmatpush3.msra.mxu1 %v689_v61  ;;  %v952_v61 = vadd.f32 %v1848_v57, %v1601_v58  ;;  %v1263_v57 = vld [vmem:[#allocation11 + $0x128] sm:$0xff] }
 0x1f0   : > { %1825 = vmatprep.subr.mxu1 %v688_v63 }
 0x1f1   : > { %1826 = vmatpush3.msra.mxu1 %v688_v63 }
 0x1f2   : > { %1828 = vmatmul.mubr.f32.vlgmr.msra.gmra.mxu1 %v653_v0  ;;  %1849 = vmatprep.subr.mxu1 %v1036_v4  ;;  %v946_v0 = vpop.f32.mrf.mxu0 }
 0x1f3   : > { %1850 = vmatpush3.msra.mxu1 %v1036_v4 }
 0x1f4   : > { %1851 = vmatprep.subr.mxu1 %v1035_v7 }
 0x1f5   : > { %1852 = vmatpush3.msra.mxu1 %v1035_v7  ;;  %v947_v7 = vadd.f32 %v1601_v58, %v946_v0  ;;  %v1231_v58 = vld [vmem:[#allocation11 + $0x28] sm:$0xff]  ;;  %v1229_v0 = vld [vmem:[#allocation11 + $0x18] sm:$0xff] }
 0x1f6   : > { %1853 = vmatprep.subr.mxu1 %v1034_v1 }
 0x1f7   : > { %1854 = vmatpush3.msra.mxu1 %v1034_v1 }
 0x1f8   : > { %1855 = vmatprep.subr.mxu1 %v1033_v12 }
 0x1f9   : > { %1856 = vmatpush3.msra.mxu1 %v1033_v12 }
 0x1fa   : > { %1857 = vmatprep.subr.mxu1 %v1032_v15 }
 0x1fb   : > { %1858 = vmatpush3.msra.mxu1 %v1032_v15 }
 0x1fc   : > { %1859 = vmatprep.subr.mxu1 %v1031_v18 }
 0x1fd   : > { %1860 = vmatpush3.msra.mxu1 %v1031_v18 }
 0x1fe   : > { %1861 = vmatprep.subr.mxu1 %v1030_v21 }
 0x1ff   : > { %1862 = vmatpush3.msra.mxu1 %v1030_v21 }
 0x200   : > { %1863 = vmatprep.subr.mxu1 %v1029_v24 }
 0x201   : > { %1864 = vmatpush3.msra.mxu1 %v1029_v24 }
 0x202   : > { %1865 = vmatprep.subr.mxu1 %v1028_v27 }
 0x203   : > { %1866 = vmatpush3.msra.mxu1 %v1028_v27  ;;  %v1241_v27 = vld [vmem:[#allocation11 + $0x78] sm:$0xff] }
 0x204   : > { %1867 = vmatprep.subr.mxu1 %v1027_v30 }
 0x205   : > { %1868 = vmatpush3.msra.mxu1 %v1027_v30  ;;  %v1272_v30 = vld [vmem:[#allocation11 + $0x170] sm:$0xff] }
 0x206   : > { %1869 = vmatprep.subr.mxu1 %v1026_v33 }
 0x207   : > { %1870 = vmatpush3.msra.mxu1 %v1026_v33  ;;  %v1271_v33 = vld [vmem:[#allocation11 + $0x168] sm:$0xff] }
 0x208   : > { %1871 = vmatprep.subr.mxu1 %v1025_v36 }
 0x209   : > { %1872 = vmatpush3.msra.mxu1 %v1025_v36  ;;  %v1270_v36 = vld [vmem:[#allocation11 + $0x160] sm:$0xff] }
 0x20a   : > { %1873 = vmatprep.subr.mxu1 %v1024_v38 }
 0x20b   : > { %1874 = vmatpush3.msra.mxu1 %v1024_v38  ;;  %v1269_v38 = vld [vmem:[#allocation11 + $0x158] sm:$0xff] }
 0x20c   : > { %1875 = vmatprep.subr.mxu1 %v1023_v41 }
 0x20d   : > { %1876 = vmatpush3.msra.mxu1 %v1023_v41  ;;  %v1268_v41 = vld [vmem:[#allocation11 + $0x150] sm:$0xff] }
 0x20e   : > { %1877 = vmatprep.subr.mxu1 %v1022_v45 }
 0x20f   : > { %1878 = vmatpush3.msra.mxu1 %v1022_v45  ;;  %v1267_v45 = vld [vmem:[#allocation11 + $0x148] sm:$0xff] }
 0x210   : > { %1879 = vmatprep.subr.mxu1 %v1021_v48 }
 0x211   : > { %1880 = vmatpush3.msra.mxu1 %v1021_v48  ;;  %v1266_v48 = vld [vmem:[#allocation11 + $0x140] sm:$0xff] }
 0x212   : > { %1884 = vmatprep.subr.mxu1 %v1273_v51 }
 0x292   : > { %v1649_v52 = vpop.f32.mrf.mxu1 }
 0x294   : > { %v1650_v53 = vpop.f32.mrf.mxu1 }
 0x295   : > { %v1651_v59 = vadd.f32 %v1650_v53, %v1649_v52  ;;  %v1233_v52 = vld [vmem:[#allocation11 + $0x38] sm:$0xff]  ;;  %v1248_v53 = vld [vmem:[#allocation11 + $0xb0] sm:$0xff] }
 0x296   : > { %v1652_v54 = vpop.f32.mrf.mxu1 }
 0x297   : > { %v778_v4 = vadd.f32 %v1651_v59, %v1598_v60  ;;  %v1246_v59 = vld [vmem:[#allocation11 + $0xa0] sm:$0xff] }
 0x298   : > { %v1653_v55 = vpop.f32.mrf.mxu1 }
 0x299   : > { %v1654_v56 = vadd.f32 %v1653_v55, %v1652_v54  ;;  %v1264_v54 = vld [vmem:[#allocation11 + $0x130] sm:$0xff] }
 0x29a   : > { %v1232_v55 = vld [vmem:[#allocation11 + $0x30] sm:$0xff] }
 0x29b   : > { %v783_v62 = vadd.f32 %v1654_v56, %v1598_v60  ;;  %v1247_v56 = vld [vmem:[#allocation11 + $0xa8] sm:$0xff]  ;;  %v1262_v60 = vld [vmem:[#allocation11 + $0x120] sm:$0xff] }
 0x2b2   : > { %v1829_v63 = vpop.f32.mrf.mxu1 }
 0x2b3   : > { %v858_v3 = vadd.f32 %v1829_v63, %v783_v62  ;;  %v1245_v62 = vld [vmem:[#allocation11 + $0x98] sm:$0xff] }
 0x2b4   : > { %v852_v5 = vpop.f32.mrf.mxu1  ;;  %v1261_v63 = vld [vmem:[#allocation11 + $0x118] sm:$0xff] }
 0x2b5   : > { %v956_v6 = vadd.f32 %v952_v61, %v858_v3  ;;  %v853_v8 = vadd.f32 %v852_v5, %v778_v4  ;;  %v1230_v61 = vld [vmem:[#allocation11 + $0x20] sm:$0xff]  ;;  %v1244_v3 = vld [vmem:[#allocation11 + $0x90] sm:$0xff] }
 0x2b6   : > { %v1260_v4 = vld [vmem:[#allocation11 + $0x110] sm:$0xff] }
 0x2b7   : > { %vm958_vm7 = vcmp.gt.f32.partialorder %v956_v6, 0.0  ;;  %v960_v9 = vmul.f32 0.2, %v956_v6  ;;  %v955_v1 = vadd.f32 %v947_v7, %v853_v8  ;;  %v1228_v5 = vld [vmem:[#allocation11 + $0x10] sm:$0xff]  ;;  %v1259_v7 = vld [vmem:[#allocation11 + $0x108] sm:$0xff] }
 0x2b8   : > { %v1227_v8 = vld [vmem:[#allocation11 + $0x8] sm:$0xff] }
 0x2b9   : > { %v2623_v10 = vsel %vm958_vm7, %v956_v6, %v960_v9  ;;  %vm957_vm8 = vcmp.gt.f32.partialorder %v955_v1, 0.0  ;;  %v959_v11 = vmul.f32 0.2, %v955_v1  ;;  %v1243_v6 = vld [vmem:[#allocation11 + $0x88] sm:$0xff]  ;;  %v1242_v9 = vld [vmem:[#allocation11 + $0x80] sm:$0xff] }
 0x2ba   : > { %v966_v12 = vrot.slane %v2623_v10, 7 }
 0x2bb   : > { %v2626_v13 = vsel %vm957_vm8, %v955_v1, %v959_v11  ;;  %v1258_v1 = vld [vmem:[#allocation11 + $0x100] sm:$0xff] }
 0x2bc   : > { %v965_v14 = vrot.slane %v2626_v13, 7  ;;  %v972_v15 = vsel %vm482_vm0, %v966_v12, 0.0  ;;  %v1226_v11 = vld [vmem:[#allocation11] sm:$0xff] }
 0x2bd   : > { %v985_v18 = vrot.slane %v972_v15, 2  ;;  %v978_v26 = vrot.slane %v972_v15, 1 }
 0x2be   : > { %v967_v16 = vsel %vm482_vm0, %v965_v14, %v966_v12  ;;  %v971_v17 = vsel %vm482_vm0, 0.0, %v965_v14 }
 0x2bf   : > { %v975_v19 = vrot.slane %v971_v17, 1  ;;  %v976_v20 = vrot.slane %v967_v16, 1  ;;  %v982_v21 = vrot.slane %v971_v17, 2  ;;  %v983_v22 = vrot.slane %v967_v16, 2 }
 0x2c1   : > { %v977_v23 = vsel %vm493_vm1, %v975_v19, %v976_v20  ;;  %v984_v24 = vsel %vm505_vm2, %v982_v21, %v983_v22  ;;  %v986_v25 = vsel %vm505_vm2, %v983_v22, %v985_v18  ;;  %v979_v29 = vsel %vm493_vm1, %v976_v20, %v978_v26 }
 0x2c2   : > { %1108 = vmatprep.mubr.f32.mxu0 %v977_v23  ;;  %1881 = vmatprep.mubr.f32.mxu1 %v984_v24 }
 0x2c3   : > { %1606 = vmatmul.mubr.msk.f32.vlgmr.msra.gmra.mxu0 %vm2604_vm6, %v965_v14  ;;  %1882 = vmatmul.mubr.f32.vlgmr.msra.gmra.mxu1 %v986_v25 }
 0x2c4   : > { %1113 = vmatprep.mubr.f32.mxu0 %v979_v29  ;;  %1740 = vmatpush3.msra.mxu0 %v1241_v27 }
 0x2c5   : > { %1885 = vmatpush3.msra.mxu1 %v1273_v51  ;;  %1741 = vmatprep.subr.mxu0 %v1256_v28  ;;  %v1265_v51 = vld [vmem:[#allocation11 + $0x138] sm:$0xff] }
 0x2c6   : > { %1886 = vmatprep.subr.mxu1 %v1272_v30  ;;  %1742 = vmatpush3.msra.mxu0 %v1240_v31 }
 0x2c7   : > { %1114 = vmatmul.mubr.f32.gmra.mxu0 %v967_v16  ;;  %1887 = vmatpush3.msra.mxu1 %v1272_v30  ;;  %v1604_v16 = vld [vmem:[%s2714_s8] ss:$0 sm:$0xff] }
 0x2c8   : > { %1743 = vmatprep.subr.mxu0 %v1255_v32  ;;  %1888 = vmatprep.subr.mxu1 %v1271_v33 }
 0x2c9   : > { %1744 = vmatpush3.msra.mxu0 %v1239_v34  ;;  %1889 = vmatpush3.msra.mxu1 %v1271_v33 }
 0x2ca   : > { %1745 = vmatprep.subr.mxu0 %v1254_v35  ;;  %1890 = vmatprep.subr.mxu1 %v1270_v36 }
 0x2cb   : > { %1746 = vmatpush3.msra.mxu0 %v1238_v2  ;;  %1891 = vmatpush3.msra.mxu1 %v1270_v36 }
 0x2cc   : > { %1747 = vmatprep.subr.mxu0 %v1253_v37  ;;  %1892 = vmatprep.subr.mxu1 %v1269_v38 }
 0x2cd   : > { %1893 = vmatpush3.msra.mxu1 %v1269_v38  ;;  %1748 = vmatpush3.msra.mxu0 %v1237_v39 }
 0x2ce   : > { %1749 = vmatprep.subr.mxu0 %v1252_v40  ;;  %1894 = vmatprep.subr.mxu1 %v1268_v41 }
 0x2cf   : > { %1750 = vmatpush3.msra.mxu0 %v1236_v43  ;;  %1895 = vmatpush3.msra.mxu1 %v1268_v41 }
 0x2d0   : > { %1751 = vmatprep.subr.mxu0 %v1251_v44  ;;  %1896 = vmatprep.subr.mxu1 %v1267_v45 }
 0x2d1   : > { %1752 = vmatpush3.msra.mxu0 %v1235_v46  ;;  %1897 = vmatpush3.msra.mxu1 %v1267_v45 }
 0x2d2   : > { %1753 = vmatprep.subr.mxu0 %v1250_v47  ;;  %1898 = vmatprep.subr.mxu1 %v1266_v48 }
 0x2d3   : > { %1754 = vmatpush3.msra.mxu0 %v1234_v49  ;;  %1899 = vmatpush3.msra.mxu1 %v1266_v48  ;;  %v1607_v48 = vld [vmem:[%s2716_s10] ss:$0 sm:$0xff] }
 0x2d4   : > { %1755 = vmatprep.subr.mxu0 %v1249_v50  ;;  %1900 = vmatprep.subr.mxu1 %v1265_v51 }
 0x2d5   : > { %1756 = vmatpush3.msra.mxu0 %v1233_v52  ;;  %1901 = vmatpush3.msra.mxu1 %v1265_v51 }
 0x2d6   : > { %1757 = vmatprep.subr.mxu0 %v1248_v53  ;;  %1902 = vmatprep.subr.mxu1 %v1264_v54 }
 0x2d7   : > { %1758 = vmatpush3.msra.mxu0 %v1232_v55  ;;  %1903 = vmatpush3.msra.mxu1 %v1264_v54 }
 0x2d8   : > { %1759 = vmatprep.subr.mxu0 %v1247_v56  ;;  %1904 = vmatprep.subr.mxu1 %v1263_v57 }
 0x2d9   : > { %1760 = vmatpush3.msra.mxu0 %v1231_v58  ;;  %1905 = vmatpush3.msra.mxu1 %v1263_v57 }
 0x2da   : > { %1761 = vmatprep.subr.mxu0 %v1246_v59  ;;  %1906 = vmatprep.subr.mxu1 %v1262_v60 }
 0x2db   : > { %1762 = vmatpush3.msra.mxu0 %v1230_v61  ;;  %1907 = vmatpush3.msra.mxu1 %v1262_v60 }
 0x2dc   : > { %1763 = vmatprep.subr.mxu0 %v1245_v62  ;;  %1908 = vmatprep.subr.mxu1 %v1261_v63 }
 0x2dd   : > { %1764 = vmatpush3.msra.mxu0 %v1229_v0  ;;  %1909 = vmatpush3.msra.mxu1 %v1261_v63 }
 0x2de   : > { %1765 = vmatprep.subr.mxu0 %v1244_v3  ;;  %1910 = vmatprep.subr.mxu1 %v1260_v4 }
 0x2df   : > { %1766 = vmatpush3.msra.mxu0 %v1228_v5  ;;  %1911 = vmatpush3.msra.mxu1 %v1260_v4 }
 0x2e0   : > { %1767 = vmatprep.subr.mxu0 %v1243_v6  ;;  %1912 = vmatprep.subr.mxu1 %v1259_v7 }
 0x2e1   : > { %1768 = vmatpush3.msra.mxu0 %v1227_v8  ;;  %1913 = vmatpush3.msra.mxu1 %v1259_v7 }
 0x2e2   : > { %1769 = vmatprep.subr.mxu0 %v1242_v9  ;;  %1914 = vmatprep.subr.mxu1 %v1258_v1 }
 0x2e3   : > { %1770 = vmatpush3.msra.mxu0 %v1226_v11  ;;  %1915 = vmatpush3.msra.mxu1 %v1258_v1 }
 0x383   : > { %v1715_v12 = vpop.f32.mrf.mxu0  ;;  %v1883_v14 = vpop.f32.mrf.mxu1 }
 0x385   : > { %v1716_v15 = vpop.f32.mrf.mxu0  ;;  %v1185_v20 = vpop.f32.mrf.mxu1 }
 0x386   : > { %v1717_v17 = vadd.f32 %v1716_v15, %v1715_v12 }
 0x387   : > { %v1718_v18 = vpop.f32.mrf.mxu0 }
 0x388   : > { %v1111_v19 = vadd.f32 %v1717_v17, %v1604_v16 }
 0x389   : > { %v1719_v21 = vpop.f32.mrf.mxu0 }
 0x38a   : > { %v1186_v22 = vadd.f32 %v1185_v20, %v1111_v19  ;;  %v1720_v23 = vadd.f32 %v1719_v21, %v1718_v18 }
 0x38c   : > { %vm1194_vm9 = vcmp.gt.f32.partialorder %v1186_v22, 0.0  ;;  %v1196_v24 = vmul.f32 0.2, %v1186_v22  ;;  %v1116_v25 = vadd.f32 %v1720_v23, %v1604_v16 }
 0x38e   : > { %v1198_v26 = vsel %vm1194_vm9, %v1186_v22, %v1196_v24  ;;  %v1191_v27 = vadd.f32 %v1883_v14, %v1116_v25 }
 0x38f   : > { %v1202_v28 = vrot.slane %v1198_v26, 7 }
 0x390   : > { %vm1195_vm10 = vcmp.gt.f32.partialorder %v1191_v27, 0.0  ;;  %v1197_v29 = vmul.f32 0.2, %v1191_v27 }
 0x391   : > { %v1208_v31 = vsel %vm482_vm0, 0.0, %v1202_v28 }
 0x392   : > { %v1199_v30 = vsel %vm1195_vm10, %v1191_v27, %v1197_v29  ;;  %v1212_v34 = vrot.slane %v1208_v31, 1  ;;  %v1219_v35 = vrot.slane %v1208_v31, 2 }
 0x393   : > { %v1203_v32 = vrot.slane %v1199_v30, 7 }
 0x395   : > { %v1204_v33 = vsel %vm482_vm0, %v1202_v28, %v1203_v32  ;;  %v1209_v36 = vsel %vm482_vm0, %v1203_v32, 0.0 }
 0x396   : > { %v1213_v2 = vrot.slane %v1204_v33, 1  ;;  %v1220_v37 = vrot.slane %v1204_v33, 2  ;;  %v1222_v38 = vrot.slane %v1209_v36, 2  ;;  %v1215_v39 = vrot.slane %v1209_v36, 1 }
 0x398   : > { %v1214_v40 = vsel %vm493_vm1, %v1212_v34, %v1213_v2  ;;  %v1221_v41 = vsel %vm505_vm2, %v1219_v35, %v1220_v37  ;;  %v1223_v43 = vsel %vm505_vm2, %v1220_v37, %v1222_v38  ;;  %v1216_v44 = vsel %vm493_vm1, %v1213_v2, %v1215_v39 }
 0x399   : > { %1345 = vmatprep.mubr.f32.mxu0 %v1214_v40  ;;  %1916 = vmatprep.mubr.f32.mxu1 %v1221_v41 }
 0x39a   : > { %1609 = vmatmul.mubr.msk.f32.vlgmr.msra.gmra.mxu0 %vm2604_vm6, %v1202_v28  ;;  %1917 = vmatmul.mubr.f32.vlgmr.msra.gmra.mxu1 %v1223_v43 }
 0x39b   : > { %1350 = vmatprep.mubr.f32.mxu0 %v1216_v44 }
 0x39e   : > { %1351 = vmatmul.mubr.f32.gmra.mxu0 %v1204_v33 }
 0x45a   : > { %v1771_v45 = vpop.f32.mrf.mxu0  ;;  %v1918_v46 = vpop.f32.mrf.mxu1 }
 0x45c   : > { %v1772_v47 = vpop.f32.mrf.mxu0  ;;  %v1422_v52 = vpop.f32.mrf.mxu1 }
 0x45d   : > { %v1773_v49 = vadd.f32 %v1772_v47, %v1771_v45 }
 0x45e   : > { %v1774_v50 = vpop.f32.mrf.mxu0 }
 0x45f   : > { %v1348_v51 = vadd.f32 %v1773_v49, %v1607_v48 }
 0x460   : > { %v1775_v42 = vpop.f32.mrf.mxu0 }
 0x461   : > { %v1423_v53 = vadd.f32 %v1422_v52, %v1348_v51  ;;  %v1776_v54 = vadd.f32 %v1775_v42, %v1774_v50 }
 0x463   : > { %v1431_v55 = vadd.f32 %v1423_v53, %v2626_v13  ;;  %v1353_v56 = vadd.f32 %v1776_v54, %v1607_v48 }
 0x465   : > { %vm1433_vm11 = vcmp.gt.f32.partialorder %v1431_v55, 0.0  ;;  %v1435_v57 = vmul.f32 0.2, %v1431_v55  ;;  %v1428_v58 = vadd.f32 %v1918_v46, %v1353_v56 }
 0x467   : > { %v1437_v59 = vsel %vm1433_vm11, %v1431_v55, %v1435_v57  ;;  %v1432_v60 = vadd.f32 %v1428_v58, %v2623_v10 }
 0x468   : > { %1439 = vst [vmem:[%s477_s15] sm:$0xff] %v1437_v59 }
 0x469   : > { %vm1434_vm12 = vcmp.gt.f32.partialorder %v1432_v60, 0.0  ;;  %v1436_v13 = vmul.f32 0.2, %v1432_v60 }
 0x46b   : > { %v1438_v61 = vsel %vm1434_vm12, %v1432_v60, %v1436_v13 }
 0x46c   : > { %1440 = vst [vmem:[%s477_s15 + $0x8] sm:$0xff] %v1438_v61 }
 0x46d   : > { %2193 = shalt.err (!%p2190_p3)
}
 0x46e   : > { %s2194_s22 = scalar_lea.hbm %s2663_s13, 256  ;;  %s2198_s16 = scalar_lea.hbm %s2717_s11, 512 }
 0x46f   : > { %p2195_p4 = scmp.ne.s32.totalorder %s2663_s13, %s2194_s22  ;;  %p2199_p2 = scmp.lt.s32.totalorder %s2663_s13, %s2717_s11 }
 0x470   : > { %p2200_p7 = scmp.lt.s32.totalorder %s2198_s16, %s2194_s22 }
 0x471   : > { %p2196_p12 = pnand %p2195_p4, %p2753_p11 }
 0x472   : > { %p2201_p8 = por %p2200_p7, %p2199_p2 }
 0x473   : > { %p2197_p6 = pneg %p2196_p12 }
 0x475   : > { %p2202_p10 = pnand %p2201_p8, %p2197_p6 }
 0x477   : > { %2205 = shalt.err (!%p2202_p10)
}
 0x478   : > { %s2269_s3 = smov 128   ;;  %s2270_s24 = smov 8  }
 0x479   : > { %1941 = dma.vmem_to_hbm [thread:$0]  (%p2753_p11), %s2658_s27, 256, %s2663_s13, %s1442_s9, %s2269_s3, %s2269_s3, %s2270_s24  }
 0x47a PF: > { %s1470_s23 = sand.u32 1, %s2244_s17   ;;  %p2754_p0 = scmp.ne.s32.totalorder %s2739_s12, 0 }
 0x47b   : > { %p2755_p13 = scmp.ge.s32.totalorder %s2256_s20, 2  ;;  %s1471_s29 = scalar_lea.sflag [#allocation4], %s1470_s23 }
 0x47d   : > { %p1964_p5 = pnand %p2755_p13, %p2754_p0 }
 0x47f   : > { %p1965_p9 = pneg %p1964_p5 }
 0x481   : > { %2239 = dma.done.wait (%p1965_p9), %s1471_s29, 256  }
 0x482   : > { %2241 = vsyncadd (%p1965_p9), %s1471_s29, 4294967040  ;;  %p27_p1 = scmp.ge.s32.totalorder %s2442_s30, 4   ;;  %s2756_s17 = smov %s2248_s18 }
 0x483   : > { %s2757_s18 = smov %s2252_s19  ;;  %s2758_s19 = smov %s2454_s28 }
 0x484   : > { %s2759_s20 = smov %s2442_s30  ;;  %29 = sbr.rel (!%p27_p1) target bundleno = 14 (0xe), region = 129 }
 0x489   :  { %1476 = vsyncpa [#allocation3], 1 }
 0x48a   :  { %1478 = vsyncpa [#allocation3 + $0x1], 1 }
 0x48b   :  { %1479 = vsyncpa [#allocation6], 1 }
 0x48c   :  { %1480 = vsyncpa [#allocation9], 1 }
 0x48d   :  { %1481 = vsyncpa [#allocation12], 1 }
 0x48e   :  { %1482 = vsyncpa [#allocation4], 1 }
 0x48f   :  { %1484 = vsyncpa [#allocation4 + $0x1], 1 }

</bundles_post_ra>
